<compile_context>
chip_gen: v5e
topology: v5e:2x2
jax: 0.10.0
libtpu: 0.0.40
codegen_flags: <defaults>
</compile_context>

<pallas_src>
import numpy as np
import jax
import jax.numpy as jnp
from jax import lax
from jax.experimental import pallas as pl
from jax.experimental.pallas import tpu as pltpu  # noqa: F401  (TPU backend)

# ----------------------- static (small synthetic) configuration -----------------------
B = 2                  # g.batch_size
E = 32                 # args.emb_size
TWO_E = 2 * E
NODES, ATT = 6, 4      # nodes / attachment points per input graph (fixed -> static)
NC = 8                 # number of candidate motifs (= len(FRAG_VOCAB) - 1)
CAND_NODES, ATT3 = 4, 2
DESC = 1024            # 'ecfp' descriptor dim
MAX_ACTION = 40
ACP = 2 * MAX_ACTION + NC
TAU, G_RATIO = 1.0, 1e-3
VOCAB_NUM = [3, 5]
STEP_LIST = [0, 1]
F32 = jnp.float32
PACK = 3 * (ATT + NC + ATT3)          # 42 packed output lanes
AUX_G1, AUX_G2, AUX_G3, AUX_MASK, AUX_W = 0, 8, 16, 24, 32
assert sum(VOCAB_NUM) == NC and PACK <= 128

# TODO(synk): the reference supports variable-length attachment sets per graph via DGL
# batching + torch.split; here ATT / ATT3 are fixed so all shapes are static.


# ------------------------------------ fused kernel ------------------------------------
def sfs_fused_kernel(att_ref, w1c_ref, gbias_ref, aux_ref, ecat3h_ref,
                     a1h1_ref, a1h2_ref,
                     a2w1_ref, a2c1_ref, a2w2_ref, a2b2_ref, a2w3_ref,
                     a3h2_ref, out_ref):
    """Single invocation: action1 -> action2 -> action3 for the whole batch, on-chip."""
    f32 = jnp.float32

    def col_to_row(col, n):
        # (n, 1) column -> (1, n) row via eye-mask + sublane reduce (no transpose op).
        eye = (lax.broadcasted_iota(jnp.int32, (n, n), 0)
               == lax.broadcasted_iota(jnp.int32, (n, n), 1)).astype(f32)
        return jnp.sum(col * eye, axis=0, keepdims=True)

    def softmax_gumbel(logits, gumbel):
        # row-wise softmax(+1e-8), log, hard gumbel-softmax one-hot (forward value only;
        # argmax(softmax(z)) == argmax(z), so the reference's second softmax is dropped).
        m = jnp.max(logits, axis=-1, keepdims=True)
        ex = jnp.exp(logits - m)
        p = ex / jnp.sum(ex, axis=-1, keepdims=True) + 1e-8
        logp = jnp.log(p)
        z = (p + gumbel * G_RATIO) / TAU
        iota = lax.broadcasted_iota(jnp.int32, z.shape, 1)
        is_max = z >= jnp.max(z, axis=-1, keepdims=True)
        idx = jnp.min(jnp.where(is_max, iota, 2 ** 30), axis=-1, keepdims=True)
        hot = (iota == idx).astype(f32)
        return p, logp, hot

    aux = aux_ref[...]
    g1 = aux[:, AUX_G1:AUX_G1 + ATT]
    g2 = aux[:, AUX_G2:AUX_G2 + NC]
    g3 = aux[:, AUX_G3:AUX_G3 + ATT3]
    maskf = aux[:, AUX_MASK:AUX_MASK + NC]

    # ------------------- action 1: attachment point on the molecule -------------------
    # graph_emb, a1_wx, a1_wy, a1_bb are already folded into w1c / gbias in the wrapper.
    att = att_ref[...]                                   # (B*ATT, 2E)
    gbias = gbias_ref[...]                               # (B, E)
    blocks = []
    for b in range(B):                                   # B=2, static unroll
        a_b = att[b * ATT:(b + 1) * ATT, :]
        blocks.append(jnp.dot(a_b, w1c_ref[b], preferred_element_type=f32)
                      + gbias[b:b + 1, :])
    att_emb = jnp.concatenate(blocks, axis=0)            # (B*ATT, E)
    h1 = jnp.maximum(jnp.dot(att_emb, a1h1_ref[...], preferred_element_type=f32), 0.0)
    lcol = jnp.sum(h1 * a1h2_ref[...], axis=-1, keepdims=True)     # (B*ATT, 1)
    lrow = col_to_row(lcol, B * ATT)                               # (1, B*ATT)
    logit1 = jnp.concatenate(
        [lrow[:, b * ATT:(b + 1) * ATT] for b in range(B)], axis=0)   # (B, ATT)
    p1, logp1, hot1 = softmax_gumbel(logit1, g1)
    emb_first = jnp.concatenate(
        [jnp.dot(hot1[b:b + 1, :], att_emb[b * ATT:(b + 1) * ATT, :],
                 preferred_element_type=f32) for b in range(B)], axis=0)  # (B, E)

    # --------------------------- action 2: candidate motif ---------------------------
    # flat (B, NC*E) layout with block-diagonal weights -> 3 lane-dense matmuls,
    # no relayouts, no selector matrices, no K=1024 dots.
    h2a = jnp.maximum(jnp.dot(emb_first, a2w1_ref[...], preferred_element_type=f32)
                      + a2c1_ref[...], 0.0)                               # (B, NC*E)
    h2b = jnp.maximum(jnp.dot(h2a, a2w2_ref[...], preferred_element_type=f32)
                      + a2b2_ref[...], 0.0)                               # (B, NC*E)
    logit2 = jnp.dot(h2b, a2w3_ref[...], preferred_element_type=f32)      # (B, NC)
    logit2 = jnp.where(maskf > 0.5, logit2, -1e8)                         # self.mask(...)
    p2, logp2, hot2 = softmax_gumbel(logit2, g2)
    # TODO(synk): ac_second_gumbel (a second, soft gumbel draw) is computed in the
    # reference forward but never used or returned, so it is omitted.

    # ----------------- action 3: attachment point on the chosen motif -----------------
    # The bilinear+linear front end only depends on the chosen candidate, so it is folded
    # per candidate in the wrapper (ecat3h); the kernel keeps the MLP + softmax/gumbel.
    h3 = jnp.maximum(jnp.dot(hot2, ecat3h_ref[...], preferred_element_type=f32), 0.0)
    logit3 = jnp.dot(h3, a3h2_ref[...], preferred_element_type=f32)       # (B, ATT3)
    p3, logp3, hot3 = softmax_gumbel(logit3, g3)
    # TODO(synk): emb_third / emb_second are computed in the reference but never returned
    # from forward, so they are omitted.

    # single lane-dense packed output (one full store, one writeback DMA)
    pad = jnp.zeros((B, 128 - PACK), f32)
    out_ref[...] = jnp.concatenate(
        [p1, logp1, hot1, p2, logp2, hot2, p3, logp3, hot3, pad], axis=1)


# ---------------------------------- parameters / glue ----------------------------------
def get_mask(t):
    """SFSPolicy.get_mask: which candidate slots are legal at step t."""
    if t >= len(STEP_LIST):
        return np.ones(NC, dtype=bool)
    m = np.zeros(NC, dtype=bool)
    start = int(np.sum(VOCAB_NUM[:STEP_LIST[t]]))
    m[start:start + VOCAB_NUM[STEP_LIST[t]]] = True
    return m


def init_params(key):
    ks = iter(jax.random.split(key, 32))

    def lin(k, din, dout):                    # torch Linear weight (out,in) pre-transposed
        return jax.random.normal(k, (din, dout), F32) / np.sqrt(din)

    def bil(k, dout, d1, d2):                 # torch Bilinear weight (out, in1, in2)
        return jax.random.normal(k, (dout, d1, d2), F32) / np.sqrt(d1 * d2)

    def row(k, d):                            # final (1, d) projection row (out dim == 1)
        return jax.random.normal(k, (1, d), F32) / np.sqrt(d)

    def bias(k, d):
        return jax.random.normal(k, (1, d), F32) * 0.01

    p = {}
    # action1_layers: Bilinear(2E,2E,E), Linear(2E,E), Linear(2E,E), [E->E//2->1]
    p['a1_wb'], p['a1_bb'] = bil(next(ks), E, TWO_E, TWO_E), bias(next(ks), E)
    p['a1_wx'], p['a1_wy'] = lin(next(ks), TWO_E, E), lin(next(ks), TWO_E, E)
    p['a1_h1'] = lin(next(ks), E, E // 2)
    p['a1_h2r'], p['a1_h2b'] = row(next(ks), E // 2), bias(next(ks), 1)
    # action2_layers: Bilinear(DESC,E,E), Linear(DESC,E), Linear(E,E), [E->E->E->1]
    p['a2_wb'], p['a2_bb'] = bil(next(ks), E, DESC, E), bias(next(ks), E)
    p['a2_wx'], p['a2_wy'] = lin(next(ks), DESC, E), lin(next(ks), E, E)
    p['a2_h1'] = lin(next(ks), E, E)
    p['a2_h2'], p['a2_h2b'] = lin(next(ks), E, E), bias(next(ks), E)
    p['a2_h3r'], p['a2_h3b'] = row(next(ks), E), bias(next(ks), 1)
    # action3_layers: same structure as action1
    p['a3_wb'], p['a3_bb'] = bil(next(ks), E, TWO_E, TWO_E), bias(next(ks), E)
    p['a3_wx'], p['a3_wy'] = lin(next(ks), TWO_E, E), lin(next(ks), TWO_E, E)
    p['a3_h1'] = lin(next(ks), E, E // 2)
    p['a3_h2r'], p['a3_h2b'] = row(next(ks), E // 2), bias(next(ks), 1)
    return p


def prepare_kernel_params(p, cand_desc):
    """One-time offline folds over module constants (cand_desc + weights).

    Action-2 is re-expressed on a flat (B, NC*E) row with block-diagonal (kron) weights
    so the kernel needs no reshapes/relayouts and no selector matrices.  The three (1,1)
    logit biases are dropped: softmax is shift-invariant and raw logits are not exposed.
    """
    T2 = jnp.einsum('ni,kij->nkj', cand_desc, p['a2_wb'])             # (NC, E_k, E_j)
    A2 = T2.transpose(2, 0, 1).reshape(E, NC * E) + jnp.tile(p['a2_wy'], (1, NC))
    l2_flat = (cand_desc @ p['a2_wx'] + p['a2_bb']).reshape(1, NC * E)
    eye_nc = jnp.eye(NC, dtype=F32)
    H1bd = jnp.kron(eye_nc, p['a2_h1'])                               # (NC*E, NC*E)
    kc = {}
    kc['g1w'] = A2 @ H1bd                                             # (E, NC*E)
    kc['c1'] = l2_flat @ H1bd                                         # (1, NC*E)
    kc['h2bd'] = jnp.kron(eye_nc, p['a2_h2'])                         # (NC*E, NC*E)
    kc['b2f'] = jnp.tile(p['a2_h2b'], (1, NC))                        # (1, NC*E)
    kc['h3bd'] = jnp.kron(eye_nc, p['a2_h3r'].T)                      # (NC*E, NC)
    kc['a1_h1'] = p['a1_h1']
    kc['a1_h2r'] = p['a1_h2r']
    eye_a3 = jnp.eye(ATT3, dtype=F32)
    kc['h3a_bd'] = jnp.kron(eye_a3, p['a3_h1'])                       # (ATT3*E, ATT3*E//2)
    kc['h3b'] = jnp.kron(eye_a3, p['a3_h2r'].T)                       # (ATT3*E//2, ATT3)
    return kc


# ------------------------------------- forward ----------------------------------------
@jax.jit
def sfs_policy_forward(params, kconst, graph_emb, node_emb, att_idx,
                       cand_node_emb, cand_att_idx, cand_graph_emb,
                       mask_rows, gumbel1, gumbel2, gumbel3):
    # masked_select glue with static attachment counts
    att_flat = node_emb[att_idx].reshape(B * ATT, TWO_E)

    # action-1: fold graph_emb into the bilinear weight per batch element (review rec.);
    # the wx linear weight and the (wy @ graph_emb + bias) vector are folded in as well.
    w1c = jnp.einsum('kij,bj->bik', params['a1_wb'], graph_emb) + params['a1_wx'][None]
    g_bias = graph_emb @ params['a1_wy'] + params['a1_bb']            # (B, E)

    # action-3 front end depends only on the candidate (not on the kernel's choices):
    # fold bilinear + linears per candidate, then pre-multiply by the block-diag a3_h1.
    cand_att = cand_node_emb[cand_att_idx].reshape(NC, ATT3, TWO_E)
    ecat3 = (jnp.einsum('kij,ci,caj->cak', params['a3_wb'], cand_graph_emb, cand_att)
             + params['a3_bb'][None]
             + (cand_graph_emb @ params['a3_wx'])[:, None, :]
             + cand_att @ params['a3_wy'])                            # (NC, ATT3, E)
    ecat3h = ecat3.reshape(NC, ATT3 * E) @ kconst['h3a_bd']           # (NC, ATT3*E//2)

    # pack the tiny per-call vectors (gumbel noise + step mask) into one lane slab
    aux = jnp.zeros((B, AUX_W), F32)
    aux = aux.at[:, AUX_G1:AUX_G1 + ATT].set(gumbel1)
    aux = aux.at[:, AUX_G2:AUX_G2 + NC].set(gumbel2)
    aux = aux.at[:, AUX_G3:AUX_G3 + ATT3].set(gumbel3)
    aux = aux.at[:, AUX_MASK:AUX_MASK + NC].set(mask_rows.astype(F32))

    # Single invocation (no grid): batch folded into rows, whole arrays resident in VMEM
    # (total working set < 1 MiB), one lane-dense packed output.
    slab = pl.pallas_call(
        sfs_fused_kernel,
        out_shape=jax.ShapeDtypeStruct((B, 128), F32),
    )(att_flat, w1c, g_bias, aux, ecat3h,
      kconst['a1_h1'], kconst['a1_h2r'],
      kconst['g1w'], kconst['c1'], kconst['h2bd'], kconst['b2f'], kconst['h3bd'],
      kconst['h3b'])

    # unpack the slab (trivial XLA slices)
    o = 0
    p1 = slab[:, o:o + ATT]; logp1 = slab[:, o + ATT:o + 2 * ATT]
    hot1 = slab[:, o + 2 * ATT:o + 3 * ATT]
    o = 3 * ATT
    p2 = slab[:, o:o + NC]; logp2 = slab[:, o + NC:o + 2 * NC]
    hot2 = slab[:, o + 2 * NC:o + 3 * NC]
    o = 3 * ATT + 3 * NC
    p3 = slab[:, o:o + ATT3]; logp3 = slab[:, o + ATT3:o + 2 * ATT3]
    hot3 = slab[:, o + 2 * ATT3:o + 3 * ATT3]

    # output formatting (padding / concatenation) -- trivial XLA ops on (B, <=88) arrays
    zpad1 = jnp.zeros((B, MAX_ACTION - ATT), F32)
    zpad3 = jnp.zeros((B, MAX_ACTION - ATT3), F32)
    ac_first_prob = jnp.concatenate([p1, zpad1], axis=1)
    log_ac_first_prob = jnp.concatenate([logp1, zpad1], axis=1)
    ac_third_prob = jnp.concatenate([p3, zpad3], axis=1)
    log_ac_third_prob = jnp.concatenate([logp3, zpad3], axis=1)
    ac_prob = jnp.concatenate([ac_first_prob, p2, ac_third_prob], axis=1)
    log_ac_prob = jnp.concatenate([log_ac_first_prob, logp2, log_ac_third_prob], axis=1)
    ac = jnp.stack([jnp.argmax(hot1, axis=-1), jnp.argmax(hot2, axis=-1),
                    jnp.argmax(hot3, axis=-1)], axis=1)
    return ac, (ac_prob, log_ac_prob), (ac_first_prob, hot2, ac_third_prob)


# ----------------------------- pure-JAX reference (check) ------------------------------
@jax.jit
def reference_forward(params, graph_emb, node_emb, att_idx, cand_node_emb, cand_att_idx,
                      cand_graph_emb, cand_desc, mask_rows, gumbel1, gumbel2, gumbel3):
    def bilinear(x, y, w, bb):                # w: torch Bilinear layout (out, in1, in2)
        return jnp.einsum('ni,kij,nj->nk', x, w, y) + bb

    def softmax_gumbel(logit_row, gumbel, emb_rows):
        p = jax.nn.softmax(logit_row, axis=-1) + 1e-8
        logp = jnp.log(p)
        idx = jnp.argmax((p + gumbel * G_RATIO) / TAU, axis=-1)
        hot = jax.nn.one_hot(idx, logit_row.shape[-1], dtype=F32)
        return p, logp, hot, jnp.einsum('bn,bnd->bd', hot, emb_rows), idx

    att = node_emb[att_idx].reshape(B * ATT, TWO_E)
    gex = jnp.repeat(graph_emb, ATT, axis=0)
    att_emb = (bilinear(att, gex, params['a1_wb'], params['a1_bb'])
               + att @ params['a1_wx'] + gex @ params['a1_wy'])
    h = jnp.maximum(att_emb @ params['a1_h1'], 0.0)
    logit1 = ((h * params['a1_h2r']).sum(-1) + params['a1_h2b'][0, 0]).reshape(B, ATT)
    p1, logp1, hot1, emb_first, ac1 = softmax_gumbel(logit1, gumbel1,
                                                     att_emb.reshape(B, ATT, E))
    ef = jnp.repeat(emb_first[:, None, :], NC, axis=1).reshape(B * NC, E)
    cd = jnp.tile(cand_desc[None], (B, 1, 1)).reshape(B * NC, DESC)
    emb_cat = (bilinear(cd, ef, params['a2_wb'], params['a2_bb'])
               + cd @ params['a2_wx'] + ef @ params['a2_wy'])
    h1 = jnp.maximum(emb_cat @ params['a2_h1'], 0.0)
    h2 = jnp.maximum(h1 @ params['a2_h2'] + params['a2_h2b'], 0.0)
    logit2 = ((h2 * params['a2_h3r']).sum(-1) + params['a2_h3b'][0, 0]).reshape(B, NC)
    logit2 = jnp.where(mask_rows, logit2, -1e8)
    p2, logp2, hot2, emb_second, ac2 = softmax_gumbel(
        logit2, gumbel2, jnp.tile(cand_graph_emb[None], (B, 1, 1)))
    cand_att = cand_node_emb[cand_att_idx].reshape(NC, ATT3, TWO_E)
    ac3_cand = cand_att[ac2].reshape(B * ATT3, TWO_E)
    es = jnp.repeat(emb_second, ATT3, axis=0)
    emb_cat3 = (bilinear(es, ac3_cand, params['a3_wb'], params['a3_bb'])
                + es @ params['a3_wx'] + ac3_cand @ params['a3_wy'])
    h3 = jnp.maximum(emb_cat3 @ params['a3_h1'], 0.0)
    logit3 = ((h3 * params['a3_h2r']).sum(-1) + params['a3_h2b'][0, 0]).reshape(B, ATT3)
    p3, logp3, hot3, _, ac3 = softmax_gumbel(logit3, gumbel3, emb_cat3.reshape(B, ATT3, E))
    pad1 = jnp.pad(p1, ((0, 0), (0, MAX_ACTION - ATT)))
    lpad1 = jnp.pad(logp1, ((0, 0), (0, MAX_ACTION - ATT)))
    pad3 = jnp.pad(p3, ((0, 0), (0, MAX_ACTION - ATT3)))
    lpad3 = jnp.pad(logp3, ((0, 0), (0, MAX_ACTION - ATT3)))
    ac = jnp.stack([ac1, ac2, ac3], axis=1)
    return ac, (jnp.concatenate([pad1, p2, pad3], axis=1),
                jnp.concatenate([lpad1, logp2, lpad3], axis=1)), (pad1, hot2, pad3)


# --------------------------------------- main ------------------------------------------
if __name__ == "__main__":
    key = jax.random.PRNGKey(0)
    k_par, k_in = jax.random.split(key)
    params = init_params(k_par)

    ks = jax.random.split(k_in, 8)
    graph_emb = jax.random.normal(ks[0], (B, TWO_E), F32)
    node_emb = jax.random.normal(ks[1], (B * NODES, TWO_E), F32)
    cand_node_emb = jax.random.normal(ks[2], (NC * CAND_NODES, TWO_E), F32)
    cand_graph_emb = jax.random.normal(ks[3], (NC, TWO_E), F32)
    cand_desc = (jax.random.uniform(ks[4], (NC, DESC)) < 0.1).astype(F32)   # ecfp-like bits
    # gumbel noise (reference uses torch's stateful draw; passed in for determinism)
    gumbel1 = jax.random.gumbel(ks[5], (B, ATT), F32)
    gumbel2 = jax.random.gumbel(ks[6], (B, NC), F32)
    gumbel3 = jax.random.gumbel(ks[7], (B, ATT3), F32)

    # attachment-point masks -> static gather indices (glue for torch.masked_select)
    att_offsets = np.array([0, 2, 3, 5])
    att_idx = jnp.asarray((np.arange(B)[:, None] * NODES + att_offsets[None, :]).reshape(-1))
    cand_att_offsets = np.array([1, 3])
    cand_att_idx = jnp.asarray(
        (np.arange(NC)[:, None] * CAND_NODES + cand_att_offsets[None, :]).reshape(-1))

    n_list = [0, 1]   # argument `n` (current step per batch element)
    mask_rows = jnp.asarray(np.stack([get_mask(t) for t in n_list], axis=0))

    # one-time offline folds over module constants (cand_desc + weights)
    kconst = prepare_kernel_params(params, cand_desc)

    out = sfs_policy_forward(params, kconst, graph_emb, node_emb, att_idx,
                             cand_node_emb, cand_att_idx, cand_graph_emb,
                             mask_rows, gumbel1, gumbel2, gumbel3)
    jax.block_until_ready(out)
    ac, (ac_prob, log_ac_prob), (ac1_prob, ac2_hot, ac3_prob) = out

    # shape checks (match the reference module's outputs)
    assert ac.shape == (B, 3)
    assert ac_prob.shape == (B, ACP) and log_ac_prob.shape == (B, ACP)
    assert ac1_prob.shape == (B, MAX_ACTION) and ac2_hot.shape == (B, NC)
    assert ac3_prob.shape == (B, MAX_ACTION)

    ac_r, (acp_r, lacp_r), (p1_r, hot2_r, p3_r) = reference_forward(
        params, graph_emb, node_emb, att_idx, cand_node_emb, cand_att_idx,
        cand_graph_emb, cand_desc, mask_rows, gumbel1, gumbel2, gumbel3)

    # With default (single-pass) MXU precision on both sides, argmax can legitimately flip
    # at near-ties, which changes every downstream conditional distribution.  We therefore
    # compare distributions conditioned on matching upstream choices, and tolerate a
    # discrete mismatch only when the reference's top-2 probabilities are nearly tied.
    ATOL_P, ATOL_LP, TIE = 3e-2, 1.5e-1, 3e-2
    acp_k, acp_rn = np.asarray(ac_prob), np.asarray(acp_r)
    lac_k, lac_rn = np.asarray(log_ac_prob), np.asarray(lacp_r)
    ac_k, ac_rn = np.asarray(ac), np.asarray(ac_r)
    hot2_k, hot2_rn = np.asarray(ac2_hot), np.asarray(hot2_r)
    s1 = slice(0, MAX_ACTION)
    s2 = slice(MAX_ACTION, MAX_ACTION + NC)
    s3 = slice(MAX_ACTION + NC, ACP)

    def near_tie(p_row):
        top = np.sort(p_row)[::-1]
        return (top[0] - top[1]) < TIE

    # action-1 distribution never depends on a discrete choice -> always compared
    np.testing.assert_allclose(acp_k[:, s1], acp_rn[:, s1], atol=ATOL_P, rtol=0)
    np.testing.assert_allclose(lac_k[:, s1], lac_rn[:, s1], atol=ATOL_LP, rtol=0)

    mask_np = np.asarray(mask_rows)
    for b in range(B):
        assert mask_np[b, int(ac_k[b, 1])]                 # chosen motif respects the mask
        assert abs(hot2_k[b].sum() - 1.0) < 1e-6           # exact one-hot
        if ac_k[b, 0] != ac_rn[b, 0]:
            assert near_tie(acp_rn[b, s1]), "action-1 mismatch beyond tie tolerance"
            continue
        np.testing.assert_allclose(acp_k[b, s2], acp_rn[b, s2], atol=ATOL_P, rtol=0)
        np.testing.assert_allclose(lac_k[b, s2], lac_rn[b, s2], atol=ATOL_LP, rtol=0)
        if ac_k[b, 1] != ac_rn[b, 1]:
            assert near_tie(acp_rn[b, s2]), "action-2 mismatch beyond tie tolerance"
            continue
        np.testing.assert_allclose(hot2_k[b], hot2_rn[b], atol=1e-6)
        np.testing.assert_allclose(acp_k[b, s3], acp_rn[b, s3], atol=ATOL_P, rtol=0)
        np.testing.assert_allclose(lac_k[b, s3], lac_rn[b, s3], atol=ATOL_LP, rtol=0)
        if ac_k[b, 2] != ac_rn[b, 2]:
            assert near_tie(acp_rn[b, s3]), "action-3 mismatch beyond tie tolerance"

    print("KERNEL_OK")
</pallas_src>

<mosaic_0001>
module attributes {stable_mosaic.version = 11 : i64} {
  func.func @sfs_fused_kernel(%arg0: memref<8x64xf32, #tpu.memory_space<vmem>>, %arg1: memref<2x64x32xf32, #tpu.memory_space<vmem>>, %arg2: memref<2x32xf32, #tpu.memory_space<vmem>>, %arg3: memref<2x32xf32, #tpu.memory_space<vmem>>, %arg4: memref<8x32xf32, #tpu.memory_space<vmem>>, %arg5: memref<32x16xf32, #tpu.memory_space<vmem>>, %arg6: memref<1x16xf32, #tpu.memory_space<vmem>>, %arg7: memref<32x256xf32, #tpu.memory_space<vmem>>, %arg8: memref<1x256xf32, #tpu.memory_space<vmem>>, %arg9: memref<256x256xf32, #tpu.memory_space<vmem>>, %arg10: memref<1x256xf32, #tpu.memory_space<vmem>>, %arg11: memref<256x8xf32, #tpu.memory_space<vmem>>, %arg12: memref<32x2xf32, #tpu.memory_space<vmem>>, %arg13: memref<2x128xf32, #tpu.memory_space<vmem>>) attributes {dimension_semantics = [], scalar_prefetch = 0 : i64, scratch_operands = 0 : i64, tpu.core_type = #tpu.core_type<tc>} {
    %c0 = arith.constant 0 : index
    %c0_0 = arith.constant 0 : index
    %0 = vector.load %arg3[%c0, %c0_0] : memref<2x32xf32, #tpu.memory_space<vmem>>, vector<2x32xf32>
    %1 = vector.extract_strided_slice %0 {offsets = [0, 0], sizes = [2, 4], strides = [1, 1]} : vector<2x32xf32> to vector<2x4xf32>
    %2 = vector.extract_strided_slice %0 {offsets = [0, 8], sizes = [2, 8], strides = [1, 1]} : vector<2x32xf32> to vector<2x8xf32>
    %3 = vector.extract_strided_slice %0 {offsets = [0, 16], sizes = [2, 2], strides = [1, 1]} : vector<2x32xf32> to vector<2x2xf32>
    %4 = vector.extract_strided_slice %0 {offsets = [0, 24], sizes = [2, 8], strides = [1, 1]} : vector<2x32xf32> to vector<2x8xf32>
    %c0_1 = arith.constant 0 : index
    %c0_2 = arith.constant 0 : index
    %5 = vector.load %arg0[%c0_1, %c0_2] : memref<8x64xf32, #tpu.memory_space<vmem>>, vector<8x64xf32>
    %c0_3 = arith.constant 0 : index
    %c0_4 = arith.constant 0 : index
    %6 = vector.load %arg2[%c0_3, %c0_4] : memref<2x32xf32, #tpu.memory_space<vmem>>, vector<2x32xf32>
    %7 = vector.extract_strided_slice %5 {offsets = [0, 0], sizes = [4, 64], strides = [1, 1]} : vector<8x64xf32> to vector<4x64xf32>
    %c0_5 = arith.constant 0 : index
    %c0_6 = arith.constant 0 : index
    %c0_7 = arith.constant 0 : index
    %8 = vector.load %arg1[%c0_5, %c0_6, %c0_7] : memref<2x64x32xf32, #tpu.memory_space<vmem>>, vector<1x64x32xf32>
    %9 = vector.shape_cast %8 : vector<1x64x32xf32> to vector<64x32xf32>
    %cst = arith.constant dense<0.000000e+00> : vector<4x32xf32>
    %10 = tpu.matmul %7, %9, %cst {dimension_numbers = #tpu.dot_dimension_numbers<[1], [0], [0], [1], [0, 0, 1, 1], [], []>} : vector<4x64xf32>, vector<64x32xf32>, vector<4x32xf32> -> vector<4x32xf32>
    %11 = vector.extract_strided_slice %6 {offsets = [0, 0], sizes = [1, 32], strides = [1, 1]} : vector<2x32xf32> to vector<1x32xf32>
    %12 = vector.broadcast %11 : vector<1x32xf32> to vector<4x32xf32>
    %13 = arith.addf %10, %12 : vector<4x32xf32>
    %14 = vector.extract_strided_slice %5 {offsets = [4, 0], sizes = [4, 64], strides = [1, 1]} : vector<8x64xf32> to vector<4x64xf32>
    %c1 = arith.constant 1 : index
    %c0_8 = arith.constant 0 : index
    %c0_9 = arith.constant 0 : index
    %15 = vector.load %arg1[%c1, %c0_8, %c0_9] : memref<2x64x32xf32, #tpu.memory_space<vmem>>, vector<1x64x32xf32>
    %16 = vector.shape_cast %15 : vector<1x64x32xf32> to vector<64x32xf32>
    %cst_10 = arith.constant dense<0.000000e+00> : vector<4x32xf32>
    %17 = tpu.matmul %14, %16, %cst_10 {dimension_numbers = #tpu.dot_dimension_numbers<[1], [0], [0], [1], [0, 0, 1, 1], [], []>} : vector<4x64xf32>, vector<64x32xf32>, vector<4x32xf32> -> vector<4x32xf32>
    %18 = vector.extract_strided_slice %6 {offsets = [1, 0], sizes = [1, 32], strides = [1, 1]} : vector<2x32xf32> to vector<1x32xf32>
    %19 = vector.broadcast %18 : vector<1x32xf32> to vector<4x32xf32>
    %20 = arith.addf %17, %19 : vector<4x32xf32>
    %21 = tpu.concatenate %13, %20 in 0 : vector<4x32xf32>, vector<4x32xf32> -> vector<8x32xf32>
    %c0_11 = arith.constant 0 : index
    %c0_12 = arith.constant 0 : index
    %22 = vector.load %arg5[%c0_11, %c0_12] : memref<32x16xf32, #tpu.memory_space<vmem>>, vector<32x16xf32>
    %cst_13 = arith.constant dense<0.000000e+00> : vector<8x16xf32>
    %23 = tpu.matmul %21, %22, %cst_13 {dimension_numbers = #tpu.dot_dimension_numbers<[1], [0], [0], [1], [0, 0, 1, 1], [], []>} : vector<8x32xf32>, vector<32x16xf32>, vector<8x16xf32> -> vector<8x16xf32>
    %cst_14 = arith.constant 0.000000e+00 : f32
    %24 = vector.broadcast %cst_14 : f32 to vector<8x16xf32>
    %25 = arith.maximumf %23, %24 : vector<8x16xf32>
    %c0_15 = arith.constant 0 : index
    %c0_16 = arith.constant 0 : index
    %26 = vector.load %arg6[%c0_15, %c0_16] : memref<1x16xf32, #tpu.memory_space<vmem>>, vector<1x16xf32>
    %27 = vector.broadcast %26 : vector<1x16xf32> to vector<8x16xf32>
    %28 = arith.mulf %25, %27 : vector<8x16xf32>
    %cst_17 = arith.constant dense<0.000000e+00> : vector<8xf32>
    %29 = vector.multi_reduction <add>, %28, %cst_17 [1] : vector<8x16xf32> to vector<8xf32>
    %30 = vector.shape_cast %29 : vector<8xf32> to vector<8x1xf32>
    %31 = tpu.iota {dimensions = array<i32: 0>} : vector<8x8xi32>
    %32 = tpu.iota {dimensions = array<i32: 1>} : vector<8x8xi32>
    %33 = arith.cmpi eq, %31, %32 : vector<8x8xi32>
    %34 = arith.extui %33 : vector<8x8xi1> to vector<8x8xi32>
    %35 = arith.sitofp %34 : vector<8x8xi32> to vector<8x8xf32>
    %36 = vector.broadcast %30 : vector<8x1xf32> to vector<8x8xf32>
    %37 = arith.mulf %36, %35 : vector<8x8xf32>
    %cst_18 = arith.constant dense<0.000000e+00> : vector<8xf32>
    %38 = vector.multi_reduction <add>, %37, %cst_18 [0] : vector<8x8xf32> to vector<8xf32>
    %39 = vector.shape_cast %38 : vector<8xf32> to vector<1x8xf32>
    %40 = vector.extract_strided_slice %39 {offsets = [0, 0], sizes = [1, 4], strides = [1, 1]} : vector<1x8xf32> to vector<1x4xf32>
    %41 = vector.extract_strided_slice %39 {offsets = [0, 4], sizes = [1, 4], strides = [1, 1]} : vector<1x8xf32> to vector<1x4xf32>
    %42 = tpu.concatenate %40, %41 in 0 : vector<1x4xf32>, vector<1x4xf32> -> vector<2x4xf32>
    %cst_19 = arith.constant dense<0xFF800000> : vector<2xf32>
    %43 = vector.multi_reduction <maximumf>, %42, %cst_19 [1] : vector<2x4xf32> to vector<2xf32>
    %44 = vector.shape_cast %43 : vector<2xf32> to vector<2x1xf32>
    %45 = vector.broadcast %44 : vector<2x1xf32> to vector<2x4xf32>
    %46 = arith.subf %42, %45 : vector<2x4xf32>
    %47 = math.exp %46 : vector<2x4xf32>
    %cst_20 = arith.constant dense<0.000000e+00> : vector<2xf32>
    %48 = vector.multi_reduction <add>, %47, %cst_20 [1] : vector<2x4xf32> to vector<2xf32>
    %49 = vector.shape_cast %48 : vector<2xf32> to vector<2x1xf32>
    %50 = vector.broadcast %49 : vector<2x1xf32> to vector<2x4xf32>
    %51 = arith.divf %47, %50 : vector<2x4xf32>
    %cst_21 = arith.constant 9.99999993E-9 : f32
    %52 = vector.broadcast %cst_21 : f32 to vector<2x4xf32>
    %53 = arith.addf %51, %52 : vector<2x4xf32>
    %54 = math.log %53 : vector<2x4xf32>
    %cst_22 = arith.constant 1.000000e-03 : f32
    %55 = vector.broadcast %cst_22 : f32 to vector<2x4xf32>
    %56 = arith.mulf %1, %55 : vector<2x4xf32>
    %57 = arith.addf %53, %56 : vector<2x4xf32>
    %cst_23 = arith.constant 1.000000e+00 : f32
    %58 = vector.broadcast %cst_23 : f32 to vector<2x4xf32>
    %59 = arith.divf %57, %58 : vector<2x4xf32>
    %60 = tpu.iota {dimensions = array<i32: 1>} : vector<2x4xi32>
    %cst_24 = arith.constant dense<0xFF800000> : vector<2xf32>
    %61 = vector.multi_reduction <maximumf>, %59, %cst_24 [1] : vector<2x4xf32> to vector<2xf32>
    %62 = vector.shape_cast %61 : vector<2xf32> to vector<2x1xf32>
    %63 = vector.broadcast %62 : vector<2x1xf32> to vector<2x4xf32>
    %64 = arith.cmpf oge, %59, %63 : vector<2x4xf32>
    %c1073741824_i32 = arith.constant 1073741824 : i32
    %65 = vector.broadcast %c1073741824_i32 : i32 to vector<2x4xi32>
    %66 = arith.select %64, %60, %65 : vector<2x4xi1>, vector<2x4xi32>
    %cst_25 = arith.constant dense<2147483647> : vector<2xi32>
    %67 = vector.multi_reduction <minsi>, %66, %cst_25 [1] : vector<2x4xi32> to vector<2xi32>
    %68 = vector.shape_cast %67 : vector<2xi32> to vector<2x1xi32>
    %69 = vector.broadcast %68 : vector<2x1xi32> to vector<2x4xi32>
    %70 = arith.cmpi eq, %60, %69 : vector<2x4xi32>
    %71 = arith.extui %70 : vector<2x4xi1> to vector<2x4xi32>
    %72 = arith.sitofp %71 : vector<2x4xi32> to vector<2x4xf32>
    %73 = vector.extract_strided_slice %72 {offsets = [0, 0], sizes = [1, 4], strides = [1, 1]} : vector<2x4xf32> to vector<1x4xf32>
    %74 = vector.extract_strided_slice %21 {offsets = [0, 0], sizes = [4, 32], strides = [1, 1]} : vector<8x32xf32> to vector<4x32xf32>
    %cst_26 = arith.constant dense<0.000000e+00> : vector<1x32xf32>
    %75 = tpu.matmul %73, %74, %cst_26 {dimension_numbers = #tpu.dot_dimension_numbers<[1], [0], [0], [1], [0, 0, 1, 1], [], []>} : vector<1x4xf32>, vector<4x32xf32>, vector<1x32xf32> -> vector<1x32xf32>
    %76 = vector.extract_strided_slice %72 {offsets = [1, 0], sizes = [1, 4], strides = [1, 1]} : vector<2x4xf32> to vector<1x4xf32>
    %77 = vector.extract_strided_slice %21 {offsets = [4, 0], sizes = [4, 32], strides = [1, 1]} : vector<8x32xf32> to vector<4x32xf32>
    %cst_27 = arith.constant dense<0.000000e+00> : vector<1x32xf32>
    %78 = tpu.matmul %76, %77, %cst_27 {dimension_numbers = #tpu.dot_dimension_numbers<[1], [0], [0], [1], [0, 0, 1, 1], [], []>} : vector<1x4xf32>, vector<4x32xf32>, vector<1x32xf32> -> vector<1x32xf32>
    %79 = tpu.concatenate %75, %78 in 0 : vector<1x32xf32>, vector<1x32xf32> -> vector<2x32xf32>
    %c0_28 = arith.constant 0 : index
    %c0_29 = arith.constant 0 : index
    %80 = vector.load %arg7[%c0_28, %c0_29] : memref<32x256xf32, #tpu.memory_space<vmem>>, vector<32x256xf32>
    %cst_30 = arith.constant dense<0.000000e+00> : vector<2x256xf32>
    %81 = tpu.matmul %79, %80, %cst_30 {dimension_numbers = #tpu.dot_dimension_numbers<[1], [0], [0], [1], [0, 0, 1, 1], [], []>} : vector<2x32xf32>, vector<32x256xf32>, vector<2x256xf32> -> vector<2x256xf32>
    %c0_31 = arith.constant 0 : index
    %c0_32 = arith.constant 0 : index
    %82 = vector.load %arg8[%c0_31, %c0_32] : memref<1x256xf32, #tpu.memory_space<vmem>>, vector<1x256xf32>
    %83 = vector.broadcast %82 : vector<1x256xf32> to vector<2x256xf32>
    %84 = arith.addf %81, %83 : vector<2x256xf32>
    %cst_33 = arith.constant 0.000000e+00 : f32
    %85 = vector.broadcast %cst_33 : f32 to vector<2x256xf32>
    %86 = arith.maximumf %84, %85 : vector<2x256xf32>
    %c0_34 = arith.constant 0 : index
    %c0_35 = arith.constant 0 : index
    %87 = vector.load %arg9[%c0_34, %c0_35] : memref<256x256xf32, #tpu.memory_space<vmem>>, vector<256x256xf32>
    %cst_36 = arith.constant dense<0.000000e+00> : vector<2x256xf32>
    %88 = tpu.matmul %86, %87, %cst_36 {dimension_numbers = #tpu.dot_dimension_numbers<[1], [0], [0], [1], [0, 0, 1, 1], [], []>} : vector<2x256xf32>, vector<256x256xf32>, vector<2x256xf32> -> vector<2x256xf32>
    %c0_37 = arith.constant 0 : index
    %c0_38 = arith.constant 0 : index
    %89 = vector.load %arg10[%c0_37, %c0_38] : memref<1x256xf32, #tpu.memory_space<vmem>>, vector<1x256xf32>
    %90 = vector.broadcast %89 : vector<1x256xf32> to vector<2x256xf32>
    %91 = arith.addf %88, %90 : vector<2x256xf32>
    %cst_39 = arith.constant 0.000000e+00 : f32
    %92 = vector.broadcast %cst_39 : f32 to vector<2x256xf32>
    %93 = arith.maximumf %91, %92 : vector<2x256xf32>
    %c0_40 = arith.constant 0 : index
    %c0_41 = arith.constant 0 : index
    %94 = vector.load %arg11[%c0_40, %c0_41] : memref<256x8xf32, #tpu.memory_space<vmem>>, vector<256x8xf32>
    %cst_42 = arith.constant dense<0.000000e+00> : vector<2x8xf32>
    %95 = tpu.matmul %93, %94, %cst_42 {dimension_numbers = #tpu.dot_dimension_numbers<[1], [0], [0], [1], [0, 0, 1, 1], [], []>} : vector<2x256xf32>, vector<256x8xf32>, vector<2x8xf32> -> vector<2x8xf32>
    %cst_43 = arith.constant 5.000000e-01 : f32
    %96 = vector.broadcast %cst_43 : f32 to vector<2x8xf32>
    %97 = arith.cmpf ogt, %4, %96 : vector<2x8xf32>
    %cst_44 = arith.constant -1.000000e+08 : f32
    %98 = vector.broadcast %cst_44 : f32 to vector<2x8xf32>
    %99 = arith.select %97, %95, %98 : vector<2x8xi1>, vector<2x8xf32>
    %cst_45 = arith.constant dense<0xFF800000> : vector<2xf32>
    %100 = vector.multi_reduction <maximumf>, %99, %cst_45 [1] : vector<2x8xf32> to vector<2xf32>
    %101 = vector.shape_cast %100 : vector<2xf32> to vector<2x1xf32>
    %102 = vector.broadcast %101 : vector<2x1xf32> to vector<2x8xf32>
    %103 = arith.subf %99, %102 : vector<2x8xf32>
    %104 = math.exp %103 : vector<2x8xf32>
    %cst_46 = arith.constant dense<0.000000e+00> : vector<2xf32>
    %105 = vector.multi_reduction <add>, %104, %cst_46 [1] : vector<2x8xf32> to vector<2xf32>
    %106 = vector.shape_cast %105 : vector<2xf32> to vector<2x1xf32>
    %107 = vector.broadcast %106 : vector<2x1xf32> to vector<2x8xf32>
    %108 = arith.divf %104, %107 : vector<2x8xf32>
    %cst_47 = arith.constant 9.99999993E-9 : f32
    %109 = vector.broadcast %cst_47 : f32 to vector<2x8xf32>
    %110 = arith.addf %108, %109 : vector<2x8xf32>
    %111 = math.log %110 : vector<2x8xf32>
    %cst_48 = arith.constant 1.000000e-03 : f32
    %112 = vector.broadcast %cst_48 : f32 to vector<2x8xf32>
    %113 = arith.mulf %2, %112 : vector<2x8xf32>
    %114 = arith.addf %110, %113 : vector<2x8xf32>
    %cst_49 = arith.constant 1.000000e+00 : f32
    %115 = vector.broadcast %cst_49 : f32 to vector<2x8xf32>
    %116 = arith.divf %114, %115 : vector<2x8xf32>
    %117 = tpu.iota {dimensions = array<i32: 1>} : vector<2x8xi32>
    %cst_50 = arith.constant dense<0xFF800000> : vector<2xf32>
    %118 = vector.multi_reduction <maximumf>, %116, %cst_50 [1] : vector<2x8xf32> to vector<2xf32>
    %119 = vector.shape_cast %118 : vector<2xf32> to vector<2x1xf32>
    %120 = vector.broadcast %119 : vector<2x1xf32> to vector<2x8xf32>
    %121 = arith.cmpf oge, %116, %120 : vector<2x8xf32>
    %c1073741824_i32_51 = arith.constant 1073741824 : i32
    %122 = vector.broadcast %c1073741824_i32_51 : i32 to vector<2x8xi32>
    %123 = arith.select %121, %117, %122 : vector<2x8xi1>, vector<2x8xi32>
    %cst_52 = arith.constant dense<2147483647> : vector<2xi32>
    %124 = vector.multi_reduction <minsi>, %123, %cst_52 [1] : vector<2x8xi32> to vector<2xi32>
    %125 = vector.shape_cast %124 : vector<2xi32> to vector<2x1xi32>
    %126 = vector.broadcast %125 : vector<2x1xi32> to vector<2x8xi32>
    %127 = arith.cmpi eq, %117, %126 : vector<2x8xi32>
    %128 = arith.extui %127 : vector<2x8xi1> to vector<2x8xi32>
    %129 = arith.sitofp %128 : vector<2x8xi32> to vector<2x8xf32>
    %c0_53 = arith.constant 0 : index
    %c0_54 = arith.constant 0 : index
    %130 = vector.load %arg4[%c0_53, %c0_54] : memref<8x32xf32, #tpu.memory_space<vmem>>, vector<8x32xf32>
    %cst_55 = arith.constant dense<0.000000e+00> : vector<2x32xf32>
    %131 = tpu.matmul %129, %130, %cst_55 {dimension_numbers = #tpu.dot_dimension_numbers<[1], [0], [0], [1], [0, 0, 1, 1], [], []>} : vector<2x8xf32>, vector<8x32xf32>, vector<2x32xf32> -> vector<2x32xf32>
    %cst_56 = arith.constant 0.000000e+00 : f32
    %132 = vector.broadcast %cst_56 : f32 to vector<2x32xf32>
    %133 = arith.maximumf %131, %132 : vector<2x32xf32>
    %c0_57 = arith.constant 0 : index
    %c0_58 = arith.constant 0 : index
    %134 = vector.load %arg12[%c0_57, %c0_58] : memref<32x2xf32, #tpu.memory_space<vmem>>, vector<32x2xf32>
    %cst_59 = arith.constant dense<0.000000e+00> : vector<2x2xf32>
    %135 = tpu.matmul %133, %134, %cst_59 {dimension_numbers = #tpu.dot_dimension_numbers<[1], [0], [0], [1], [0, 0, 1, 1], [], []>} : vector<2x32xf32>, vector<32x2xf32>, vector<2x2xf32> -> vector<2x2xf32>
    %cst_60 = arith.constant dense<0xFF800000> : vector<2xf32>
    %136 = vector.multi_reduction <maximumf>, %135, %cst_60 [1] : vector<2x2xf32> to vector<2xf32>
    %137 = vector.shape_cast %136 : vector<2xf32> to vector<2x1xf32>
    %138 = vector.broadcast %137 : vector<2x1xf32> to vector<2x2xf32>
    %139 = arith.subf %135, %138 : vector<2x2xf32>
    %140 = math.exp %139 : vector<2x2xf32>
    %cst_61 = arith.constant dense<0.000000e+00> : vector<2xf32>
    %141 = vector.multi_reduction <add>, %140, %cst_61 [1] : vector<2x2xf32> to vector<2xf32>
    %142 = vector.shape_cast %141 : vector<2xf32> to vector<2x1xf32>
    %143 = vector.broadcast %142 : vector<2x1xf32> to vector<2x2xf32>
    %144 = arith.divf %140, %143 : vector<2x2xf32>
    %cst_62 = arith.constant 9.99999993E-9 : f32
    %145 = vector.broadcast %cst_62 : f32 to vector<2x2xf32>
    %146 = arith.addf %144, %145 : vector<2x2xf32>
    %147 = math.log %146 : vector<2x2xf32>
    %cst_63 = arith.constant 1.000000e-03 : f32
    %148 = vector.broadcast %cst_63 : f32 to vector<2x2xf32>
    %149 = arith.mulf %3, %148 : vector<2x2xf32>
    %150 = arith.addf %146, %149 : vector<2x2xf32>
    %cst_64 = arith.constant 1.000000e+00 : f32
    %151 = vector.broadcast %cst_64 : f32 to vector<2x2xf32>
    %152 = arith.divf %150, %151 : vector<2x2xf32>
    %153 = tpu.iota {dimensions = array<i32: 1>} : vector<2x2xi32>
    %cst_65 = arith.constant dense<0xFF800000> : vector<2xf32>
    %154 = vector.multi_reduction <maximumf>, %152, %cst_65 [1] : vector<2x2xf32> to vector<2xf32>
    %155 = vector.shape_cast %154 : vector<2xf32> to vector<2x1xf32>
    %156 = vector.broadcast %155 : vector<2x1xf32> to vector<2x2xf32>
    %157 = arith.cmpf oge, %152, %156 : vector<2x2xf32>
    %c1073741824_i32_66 = arith.constant 1073741824 : i32
    %158 = vector.broadcast %c1073741824_i32_66 : i32 to vector<2x2xi32>
    %159 = arith.select %157, %153, %158 : vector<2x2xi1>, vector<2x2xi32>
    %cst_67 = arith.constant dense<2147483647> : vector<2xi32>
    %160 = vector.multi_reduction <minsi>, %159, %cst_67 [1] : vector<2x2xi32> to vector<2xi32>
    %161 = vector.shape_cast %160 : vector<2xi32> to vector<2x1xi32>
    %162 = vector.broadcast %161 : vector<2x1xi32> to vector<2x2xi32>
    %163 = arith.cmpi eq, %153, %162 : vector<2x2xi32>
    %164 = arith.extui %163 : vector<2x2xi1> to vector<2x2xi32>
    %165 = arith.sitofp %164 : vector<2x2xi32> to vector<2x2xf32>
    %cst_68 = arith.constant 0.000000e+00 : f32
    %166 = vector.broadcast %cst_68 : f32 to vector<2x86xf32>
    %167 = tpu.concatenate %53, %54, %72, %110, %111, %129, %146, %147, %165, %166 in 1 : vector<2x4xf32>, vector<2x4xf32>, vector<2x4xf32>, vector<2x8xf32>, vector<2x8xf32>, vector<2x8xf32>, vector<2x2xf32>, vector<2x2xf32>, vector<2x2xf32>, vector<2x86xf32> -> vector<2x128xf32>
    %c0_69 = arith.constant 0 : index
    %c0_70 = arith.constant 0 : index
    %168 = vector.load %arg13[%c0_69, %c0_70] : memref<2x128xf32, #tpu.memory_space<vmem>>, vector<2x128xf32>
    tpu.vector_store %arg13[%c0_69, %c0_70], %167 {strides = array<i32>} : memref<2x128xf32, #tpu.memory_space<vmem>>, vector<2x128xf32>,
    return
  }
}

</mosaic_0001>

<bundles_post_ra>
// kernel: sfs_policy_forward.1
= control target key start
LH: loop header
LB: loop body
LE: loop exit
PB: predicated region body
PF: predicated region fallthrough
CT: control target
= control target key end

     0   :  { %vm56_vm0 = vcmask 523264   ;;  %vm116_vm1 = vcmask 1043456   ;;  %vm122_vm2 = vcmask 261120   ;;  %vm152_vm3 = vcmask 130048   ;;  %s857_s27 = smov 8   ;;  %s859_s28 = smov 4   ;;  %s1405_s1 = inlined_call_operand.vmem [shape: f32[2,64,32], index: 1, kind: input, shape index: {}]   ;;  %s1406_s0 = inlined_call_operand.vmem [shape: f32[8,64], index: 0, kind: input, shape index: {}]   ;;  %s1407_s5 = inlined_call_operand.vmem [shape: f32[32,16], index: 5, kind: input, shape index: {}]   ;;  %s1408_s2 = inlined_call_operand.vmem [shape: f32[2,32], index: 2, kind: input, shape index: {}]   ;;  %s1409_s6 = inlined_call_operand.vmem [shape: f32[1,16], index: 6, kind: input, shape index: {}]   ;;  %s1410_s3 = inlined_call_operand.vmem [shape: f32[2,32], index: 3, kind: input, shape index: {}]   ;;  %s1411_s7 = inlined_call_operand.vmem [shape: f32[32,256], index: 7, kind: input, shape index: {}]   ;;  %s1412_s9 = inlined_call_operand.vmem [shape: f32[256,256], index: 9, kind: input, shape index: {}]   ;;  %s1413_s11 = inlined_call_operand.vmem [shape: f32[256,8], index: 11, kind: input, shape index: {}]   ;;  %s1414_s8 = inlined_call_operand.vmem [shape: f32[1,256], index: 8, kind: input, shape index: {}]   ;;  %s1415_s10 = inlined_call_operand.vmem [shape: f32[1,256], index: 10, kind: input, shape index: {}]   ;;  %s1416_s4 = inlined_call_operand.vmem [shape: f32[8,32], index: 4, kind: input, shape index: {}]   ;;  %s1417_s12 = inlined_call_operand.vmem [shape: f32[32,2], index: 12, kind: input, shape index: {}]   ;;  %s1418_s13 = inlined_call_operand.vmem [shape: f32[2,128], index: 13, kind: output, shape index: {}]  }
   0x1   :  { %v54_v0 = vld [vmem:[%s1405_s1 + $0x38] sm:$0xff]  ;;  %v53_v1 = vld [vmem:[%s1405_s1 + $0x30] sm:$0xff]  ;;  %v52_v4 = vld [vmem:[%s1405_s1 + $0x28] sm:$0xff]  ;;  %v156_v37 = vlaneseq  ;;  %v852_v40 = vmov 0.0   ;;  %vm164_vm5 = vcmask 64512   ;;  %vm176_vm6 = vcmask 1040384  }
   0x2   :  { %68 = vmatpush.msra.mxu2 %v54_v0  ;;  %v805_v2 = vld [vmem:[%s1405_s1 + $0x78] sm:$0xff]  ;;  %v804_v3 = vld [vmem:[%s1405_s1 + $0x70] sm:$0xff]  ;;  %v803_v5 = vld [vmem:[%s1405_s1 + $0x68] sm:$0xff]  ;;  %vm178_vm7 = vcmask 25600   ;;  %vm231_vm14 = vcmask 31744   ;;  %s861_s29 = smov 28  }
   0x3   :  { %101 = vmatpush.msra.mxu1 %v805_v2  ;;  %v51_v6 = vld [vmem:[%s1405_s1 + $0x20] sm:$0xff]  ;;  %v50_v8 = vld [vmem:[%s1405_s1 + $0x18] sm:$0xff]  ;;  %v49_v10 = vld [vmem:[%s1405_s1 + $0x10] sm:$0xff]  ;;  %v157_v38 = vshrl.u32 %v156_v37, 7  ;;  %v1005_v39 = vand.u32 127, %v156_v37  ;;  %s864_s30 = smov 40  }
   0x4   :  { %69 = vmatpush.msra.mxu2 %v53_v1  ;;  %v802_v7 = vld [vmem:[%s1405_s1 + $0x60] sm:$0xff]  ;;  %v801_v9 = vld [vmem:[%s1405_s1 + $0x58] sm:$0xff]  ;;  %v800_v11 = vld [vmem:[%s1405_s1 + $0x50] sm:$0xff] }
   0x5   :  { %102 = vmatpush.msra.mxu1 %v804_v3  ;;  %v48_v12 = vld [vmem:[%s1405_s1 + $0x8] sm:$0xff]  ;;  %v47_v14 = vld [vmem:[%s1405_s1] sm:$0xff]  ;;  %v121_v18 = vld [vmem:[%s1407_s5 + $0x18] sm:$0xff]  ;;  %vm160_vm4 = vcmp.eq.s32.totalorder %v157_v38, %v1005_v39 }
   0x6   :  { %70 = vmatpush.msra.mxu2 %v52_v4  ;;  %v799_v13 = vld [vmem:[%s1405_s1 + $0x48] sm:$0xff]  ;;  %v45_v15 = vld [vmem:[%s1406_s0] sm:$0xff]  ;;  %v120_v19 = vld [vmem:[%s1407_s5 + $0x10] sm:$0xff]  ;;  %v808_v41 = vsel %vm160_vm4, 1.0, %v852_v40  ;;  %s860_s0 = smov 116  }
   0x7   :  { %103 = vmatpush.msra.mxu1 %v803_v5  ;;  %v90_v16 = vrot.slane %v45_v15, 4  ;;  %v798_v17 = vld [vmem:[%s1405_s1 + $0x40] sm:$0xff]  ;;  %v119_v20 = vld [vmem:[%s1407_s5 + $0x8] sm:$0xff]  ;;  %v408_v37 = vld [vmem:[%s1412_s9 + $0x1f0] sm:$0xff]  ;;  %s863_s1 = smov 36  }
   0x8   :  { %71 = vmatpush.msra.mxu2 %v51_v6  ;;  %v118_v21 = vld [vmem:[%s1407_s5] sm:$0xff]  ;;  %v377_v38 = vld [vmem:[%s1412_s9 + $0xf8] sm:$0xff] }
   0x9   :  { %104 = vmatpush.msra.mxu1 %v802_v7  ;;  %v46_v22 = vld [vmem:[%s1408_s2] sm:$0x3]  ;;  %s853_s2 = smov 124  }
   0xa   :  { %72 = vmatpush.msra.mxu2 %v50_v8  ;;  %v89_v23 = vperm.slane %v46_v22, 1  ;;  %v55_v26 = vperm.slane %v46_v22, 0  ;;  %v833_v32 = vld [vmem:[%s1409_s6] ss:$0 sm:$0xff] }
   0xb   :  { %105 = vmatpush.msra.mxu1 %v801_v9  ;;  %v1017_v4 = vld [vmem:[%s1410_s3] sm:$0x3] }
   0xc   :  { %73 = vmatpush.msra.mxu2 %v49_v10  ;;  %v1020_v8 = vmul.f32 0.001, %v1017_v4 }
   0xd   :  { %106 = vmatpush.msra.mxu1 %v800_v11 }
   0xe   :  { %74 = vmatpush.msra.mxu2 %v48_v12 }
   0xf   :  { %107 = vmatpush.msra.mxu1 %v799_v13 }
  0x10   :  { %75 = vmatpush.msra.mxu2 %v47_v14 }
  0x11   :  { %797 = vmatmul.msk.f32.vlgmr.msra.gmra.mxu2 %vm56_vm0, %v45_v15  ;;  %108 = vmatpush.msra.mxu1 %v798_v17 }
  0x12   :  { %806 = vmatmul.msk.f32.vlgmr.msra.gmra.mxu1 %vm56_vm0, %v90_v16  ;;  %138 = vmatpush.msrb.mxu2 %v121_v18  ;;  %vm570_vm0 = vcmp.gt.f32.partialorder %v1017_v4, 0.5 }
  0x13   :  { %436 = vmatpush.msrb.mxu1 %v408_v37  ;;  %v383_v37 = vld [vmem:[%s1412_s9 + $0x128] sm:$0xff] }
  0x14   :  { %139 = vmatpush.msrb.mxu2 %v120_v19 }
  0x16   :  { %140 = vmatpush.msrb.mxu2 %v119_v20 }
  0x18   :  { %141 = vmatpush.msrb.mxu2 %v118_v21 }
  0x8f   :  { %v110_v24 = vpop.f32.mrf.mxu1 }
  0x90   :  { %v111_v25 = vadd.f32 %v110_v24, %v89_v23 }
  0x92   :  { %v114_v27 = vrot.slane %v111_v25, 4 }
  0x94   :  { %v77_v28 = vpop.f32.mrf.mxu2 }
  0x95   :  { %v78_v29 = vadd.f32 %v77_v28, %v55_v26  ;;  %v293_v28 = vld [vmem:[%s1411_s7 + $0x30] sm:$0xff] }
  0x96   :  { %316 = vmatpush.msra.mxu2 %v293_v28  ;;  %v384_v28 = vld [vmem:[%s1412_s9 + $0x130] sm:$0xff] }
  0x97   :  { %v117_v30 = vsel %vm116_vm1, %v78_v29, %v114_v27  ;;  %v294_v29 = vld [vmem:[%s1411_s7 + $0x38] sm:$0xff] }
  0x98   :  { %807 = vmatmul.msk.f32.vlgmr.msrb.gmra.mxu2 %vm122_vm2, %v117_v30  ;;  %810 = vmatpush.msk.msra.mxu3 %vm116_vm1, %v117_v30  ;;  %v258_v31 = vrot.slane %v117_v30, 4  ;;  %v291_v30 = vld [vmem:[%s1411_s7 + $0x20] sm:$0xff] }
  0x99   :  { %317 = vmatpush.msra.mxu2 %v291_v30  ;;  %v385_v30 = vld [vmem:[%s1412_s9 + $0x138] sm:$0xff] }
  0x9a   :  { %812 = vmatpush.msk.msrb.mxu3 %vm116_vm1, %v258_v31  ;;  %v292_v31 = vld [vmem:[%s1411_s7 + $0x28] sm:$0xff]  ;;  %vm576_vm1 = vcmask 255168  }
 0x11b   :  { %v143_v33 = vpop.f32.mrf.mxu2 }
 0x11c   :  { %v146_v34 = vmax.f32 %v143_v33, 0.0  ;;  %v290_v33 = vld [vmem:[%s1411_s7 + $0x18] sm:$0xff] }
 0x11e   :  { %v151_v35 = vmul.f32 %v833_v32, %v146_v34  ;;  %v289_v32 = vld [vmem:[%s1411_s7 + $0x10] sm:$0xff]  ;;  %v287_v34 = vld [vmem:[%s1411_s7] sm:$0xff] }
 0x11f   :  { %318 = vmatpush.msra.mxu2 %v289_v32 }
 0x120   :  { %v153_v36 = vsel %vm152_vm3, %v151_v35, 0.0  ;;  %v288_v35 = vld [vmem:[%s1411_s7 + $0x8] sm:$0xff]  ;;  %s856_s7 = smov 16   ;;  %vm587_vm3 = vcmask 58368  }
 0x121   :  { %154 = vadd.xlane.f32.xlu0 %v153_v36  ;;  %319 = vmatpush.msra.mxu2 %v287_v34  ;;  %v376_v36 = vld [vmem:[%s1412_s9 + $0xf0] sm:$0xff]  ;;  %v350_v34 = vld [vmem:[%s1412_s9 + $0x20] sm:$0xff] }
 0x122   :  { %416 = vmatpush.msra.mxu0 %v376_v36  ;;  %v351_v36 = vld [vmem:[%s1412_s9 + $0x28] sm:$0xff] }
 0x123   :  { %456 = vmatpush.msrb.mxu2 %v377_v38  ;;  %v348_v38 = vld [vmem:[%s1412_s9 + $0x10] sm:$0xff] }
 0x194   :  { %v155_v42 = vpop.xlane.xlu0 %154 }
 0x195   :  { %v163_v43 = vmul.f32 %v808_v41, %v155_v42  ;;  %v409_v41 = vld [vmem:[%s1412_s9 + $0x1f8] sm:$0xff]  ;;  %v374_v42 = vld [vmem:[%s1412_s9 + $0xe0] sm:$0xff] }
 0x196   :  { %417 = vmatpush.msra.mxu0 %v374_v42  ;;  %v349_v42 = vld [vmem:[%s1412_s9 + $0x18] sm:$0xff] }
 0x197   :  { %v165_v44 = vsel %vm164_vm5, %v163_v43, 0.0  ;;  %v406_v43 = vld [vmem:[%s1412_s9 + $0x1e0] sm:$0xff] }
 0x198   :  { %v166_v45 = vrot.slane %v165_v44, 4  ;;  %437 = vmatpush.msrb.mxu1 %v406_v43  ;;  %v381_v43 = vld [vmem:[%s1412_s9 + $0x118] sm:$0xff] }
 0x19a   :  { %v167_v46 = vadd.f32 %v166_v45, %v165_v44  ;;  %v375_v44 = vld [vmem:[%s1412_s9 + $0xe8] sm:$0xff] }
 0x19b   :  { %v407_v45 = vld [vmem:[%s1412_s9 + $0x1e8] sm:$0xff]  ;;  %457 = vmatpush.msrb.mxu2 %v375_v44  ;;  %v346_v44 = vld [vmem:[%s1412_s9] sm:$0xff] }
 0x19c   :  { %v168_v47 = vrot.slane %v167_v46, 2 }
 0x19e   :  { %v169_v48 = vadd.f32 %v168_v47, %v167_v46  ;;  %v372_v46 = vld [vmem:[%s1412_s9 + $0xd0] sm:$0xff] }
 0x19f   :  { %v404_v47 = vld [vmem:[%s1412_s9 + $0x1d0] sm:$0xff]  ;;  %418 = vmatpush.msra.mxu0 %v372_v46  ;;  %v347_v46 = vld [vmem:[%s1412_s9 + $0x8] sm:$0xff] }
 0x1a0   :  { %v170_v49 = vrot.slane %v169_v48, 1  ;;  %438 = vmatpush.msrb.mxu1 %v404_v47  ;;  %v379_v47 = vld [vmem:[%s1412_s9 + $0x108] sm:$0xff] }
 0x1a2   :  { %v171_v50 = vadd.f32 %v170_v49, %v169_v48  ;;  %v373_v48 = vld [vmem:[%s1412_s9 + $0xd8] sm:$0xff] }
 0x1a3   :  { %v405_v49 = vld [vmem:[%s1412_s9 + $0x1d8] sm:$0xff]  ;;  %458 = vmatpush.msrb.mxu2 %v373_v48 }
 0x1a4   :  { %173 = vrot.lane.b32.xlu0 %v171_v50, %s853_s2  ;;  %v513_v48 = vld [vmem:[%s1413_s11 + $0x78] sm:$0xff] }
 0x216   :  { %v174_v51 = vpop.permute.xlu0 %173 }
 0x217   :  { %v177_v52 = vsel %vm176_vm6, %v171_v50, %v174_v51  ;;  %v370_v50 = vld [vmem:[%s1412_s9 + $0xc0] sm:$0xff] }
 0x218   :  { %v179_v53 = vsel %vm178_vm7, %v177_v52, -inf  ;;  %v402_v51 = vld [vmem:[%s1412_s9 + $0x1c0] sm:$0xff]  ;;  %419 = vmatpush.msra.mxu0 %v370_v50  ;;  %v529_v50 = vld [vmem:[%s1413_s11 + $0xf8] sm:$0xff] }
 0x219   :  { %180 = vmax.xlane.f32.xlu1 %v179_v53  ;;  %v403_v53 = vld [vmem:[%s1412_s9 + $0x1c8] sm:$0xff]  ;;  %439 = vmatpush.msrb.mxu1 %v402_v51 }
 0x21a   :  { %v511_v51 = vld [vmem:[%s1413_s11 + $0x68] sm:$0xff] }
 0x28c   :  { %v181_v54 = vpop.xlane.xlu1 %180 }
 0x28d   :  { %v182_v55 = vsub.f32 %v177_v52, %v181_v54  ;;  %v371_v52 = vld [vmem:[%s1412_s9 + $0xc8] sm:$0xff]  ;;  %v368_v54 = vld [vmem:[%s1412_s9 + $0xb0] sm:$0xff] }
 0x28e   :  { %459 = vmatpush.msrb.mxu2 %v371_v52  ;;  %420 = vmatpush.msra.mxu0 %v368_v54  ;;  %v528_v52 = vld [vmem:[%s1413_s11 + $0xf0] sm:$0xff]  ;;  %v510_v54 = vld [vmem:[%s1413_s11 + $0x60] sm:$0xff] }
 0x28f   :  { %v183_v56 = vmul.f32 1.442695, %v182_v55  ;;  %v400_v55 = vld [vmem:[%s1412_s9 + $0x1b0] sm:$0xff] }
 0x290   :  { %440 = vmatpush.msrb.mxu1 %v400_v55  ;;  %v526_v55 = vld [vmem:[%s1413_s11 + $0xe0] sm:$0xff] }
 0x291   :  { %834 = vpow2.f32 %v183_v56  ;;  %v369_v56 = vld [vmem:[%s1412_s9 + $0xb8] sm:$0xff] }
 0x292   :  { %460 = vmatpush.msrb.mxu2 %v369_v56  ;;  %v509_v56 = vld [vmem:[%s1413_s11 + $0x58] sm:$0xff] }
 0x297   :  { %v835_v57 = vpop.eup %834 }
 0x298   :  { %v185_v58 = vsel %vm178_vm7, %v835_v57, 0.0 }
 0x299   :  { %186 = vadd.xlane.f32.xlu1 %v185_v58  ;;  %v366_v58 = vld [vmem:[%s1412_s9 + $0xa0] sm:$0xff] }
 0x29a   :  { %421 = vmatpush.msra.mxu0 %v366_v58  ;;  %v508_v58 = vld [vmem:[%s1413_s11 + $0x50] sm:$0xff] }
 0x30c   :  { %v187_v59 = vpop.xlane.xlu1 %186 }
 0x30d   :  { %836 = vrcp.f32 %v187_v59  ;;  %v199_v63 = vand.u32 2147483648, %v187_v59  ;;  %v197_v1 = vand.u32 2147483647, %v187_v59  ;;  %vm193_vm9 = vweird.f32 %v187_v59 }
 0x30f   :  { %v200_v3 = vor.u32 1.1754944e-38, %v199_v63  ;;  %vm198_vm11 = vcmp.eq.f32.partialorder %v197_v1, 8.507059e+37  ;;  %v396_v63 = vld [vmem:[%s1412_s9 + $0x190] sm:$0xff]  ;;  %v397_v1 = vld [vmem:[%s1412_s9 + $0x198] sm:$0xff] }
 0x313   :  { %v837_v60 = vpop.eup %836 }
 0x314   :  { %v189_v61 = vmul.f32 %v837_v60, %v187_v59  ;;  %vm194_vm8 = vweird.f32 %v837_v60  ;;  %v398_v59 = vld [vmem:[%s1412_s9 + $0x1a0] sm:$0xff] }
 0x315   :  { %vm195_vm10 = vmor %vm193_vm9, %vm194_vm8  ;;  %441 = vmatpush.msrb.mxu1 %v398_v59  ;;  %v524_v59 = vld [vmem:[%s1413_s11 + $0xd0] sm:$0xff] }
 0x316   :  { %v190_v62 = vsub.f32 1.0, %v189_v61  ;;  %v399_v61 = vld [vmem:[%s1412_s9 + $0x1a8] sm:$0xff] }
 0x317   :  { %442 = vmatpush.msrb.mxu1 %v396_v63  ;;  %v522_v63 = vld [vmem:[%s1413_s11 + $0xc0] sm:$0xff] }
 0x318   :  { %v191_v0 = vmul.f32 %v837_v60, %v190_v62  ;;  %v364_v62 = vld [vmem:[%s1412_s9 + $0x90] sm:$0xff] }
 0x319   :  { %422 = vmatpush.msra.mxu0 %v364_v62  ;;  %v506_v62 = vld [vmem:[%s1413_s11 + $0x40] sm:$0xff] }
 0x31a   :  { %v192_v2 = vadd.f32 %v837_v60, %v191_v0  ;;  %v365_v0 = vld [vmem:[%s1412_s9 + $0x98] sm:$0xff] }
 0x31c   :  { %v196_v5 = vsel %vm195_vm10, %v837_v60, %v192_v2  ;;  %v367_v60 = vld [vmem:[%s1412_s9 + $0xa8] sm:$0xff]  ;;  %v362_v2 = vld [vmem:[%s1412_s9 + $0x80] sm:$0xff] }
 0x31d   :  { %v201_v6 = vsel %vm198_vm11, %v200_v3, %v196_v5  ;;  %461 = vmatpush.msrb.mxu2 %v367_v60  ;;  %v394_v3 = vld [vmem:[%s1412_s9 + $0x180] sm:$0xff]  ;;  %v363_v5 = vld [vmem:[%s1412_s9 + $0x88] sm:$0xff]  ;;  %423 = vmatpush.msra.mxu0 %v362_v2  ;;  %v504_v2 = vld [vmem:[%s1413_s11 + $0x30] sm:$0xff] }
 0x31e   :  { %v202_v7 = vmul.f32 %v835_v57, %v201_v6  ;;  %v401_v57 = vld [vmem:[%s1412_s9 + $0x1b8] sm:$0xff]  ;;  %v395_v6 = vld [vmem:[%s1412_s9 + $0x188] sm:$0xff]  ;;  %443 = vmatpush.msrb.mxu1 %v394_v3 }
 0x31f   :  { %462 = vmatpush.msrb.mxu2 %v365_v0  ;;  %v507_v60 = vld [vmem:[%s1413_s11 + $0x48] sm:$0xff]  ;;  %v505_v0 = vld [vmem:[%s1413_s11 + $0x38] sm:$0xff] }
 0x320   :  { %v1022_v9 = vadd.f32 1e-08, %v202_v7  ;;  %v360_v7 = vld [vmem:[%s1412_s9 + $0x70] sm:$0xff]  ;;  %v503_v3 = vld [vmem:[%s1413_s11 + $0x28] sm:$0xff] }
 0x321   :  { %463 = vmatpush.msrb.mxu2 %v363_v5  ;;  %424 = vmatpush.msra.mxu0 %v360_v7  ;;  %v295_v5 = vld [vmem:[%s1414_s8] sm:$0x3] }
 0x322   :  { %v207_v10 = vadd.f32 %v1020_v8, %v1022_v9  ;;  %v297_v7 = vperm.slane %v295_v5, 0 }
 0x324   :  { %v208_v11 = vsel %vm178_vm7, %v207_v10, -inf }
 0x325   :  { %209 = vmax.xlane.f32.xlu2 %v208_v11  ;;  %v361_v11 = vld [vmem:[%s1412_s9 + $0x78] sm:$0xff] }
 0x326   :  { %464 = vmatpush.msrb.mxu2 %v361_v11 }
 0x398   :  { %v210_v12 = vpop.xlane.xlu2 %209 }
 0x399   :  { %vm211_vm12 = vcmp.ge.f32.partialorder %v207_v10, %v210_v12  ;;  %v392_v10 = vld [vmem:[%s1412_s9 + $0x170] sm:$0xff]  ;;  %v393_v12 = vld [vmem:[%s1412_s9 + $0x178] sm:$0xff] }
 0x39a   :  { %v212_v13 = vsel %vm211_vm12, %v1005_v39, 1073741824  ;;  %444 = vmatpush.msrb.mxu1 %v392_v10  ;;  %v298_v10 = vperm.slane %v295_v5, 1  ;;  %vm691_vm12 = vcmask 9216  }
 0x39b   :  { %v213_v14 = vsel %vm178_vm7, %v212_v13, 2147483647  ;;  %v358_v13 = vld [vmem:[%s1412_s9 + $0x60] sm:$0xff] }
 0x39c   :  { %v215_v15 = vshra.s32 %v213_v14, 16  ;;  %v214_v17 = vand.u32 65535, %v213_v14  ;;  %v390_v14 = vld [vmem:[%s1412_s9 + $0x160] sm:$0xff]  ;;  %425 = vmatpush.msra.mxu0 %v358_v13 }
 0x39d   :  { %445 = vmatpush.msrb.mxu1 %v390_v14 }
 0x39e   :  { %v217_v16 = vcvt.s32.f32 %v215_v15  ;;  %v216_v19 = vcvt.s32.f32 %v214_v17  ;;  %v359_v15 = vld [vmem:[%s1412_s9 + $0x68] sm:$0xff]  ;;  %v356_v17 = vld [vmem:[%s1412_s9 + $0x50] sm:$0xff] }
 0x39f   :  { %465 = vmatpush.msrb.mxu2 %v359_v15  ;;  %426 = vmatpush.msra.mxu0 %v356_v17  ;;  %v501_v17 = vld [vmem:[%s1413_s11 + $0x18] sm:$0xff] }
 0x3a0   :  { %218 = vmin.xlane.f32.xlu2 %v217_v16 }
 0x413   :  { %v219_v18 = vpop.xlane.xlu2 %218 }
 0x414   :  { %vm220_vm13 = vcmp.eq.f32.partialorder %v217_v16, %v219_v18  ;;  %v225_v21 = vcvt.f32.s32 %v219_v18  ;;  %v391_v16 = vld [vmem:[%s1412_s9 + $0x168] sm:$0xff]  ;;  %v388_v18 = vld [vmem:[%s1412_s9 + $0x150] sm:$0xff] }
 0x415   :  { %v221_v20 = vsel %vm220_vm13, %v216_v19, inf  ;;  %v357_v19 = vld [vmem:[%s1412_s9 + $0x58] sm:$0xff]  ;;  %446 = vmatpush.msrb.mxu1 %v388_v18  ;;  %v520_v18 = vld [vmem:[%s1413_s11 + $0xb0] sm:$0xff] }
 0x416   :  { %222 = vmin.xlane.f32.xlu1 %v221_v20  ;;  %v226_v23 = vshll.u32 %v225_v21, 16  ;;  %v389_v20 = vld [vmem:[%s1412_s9 + $0x158] sm:$0xff]  ;;  %466 = vmatpush.msrb.mxu2 %v357_v19  ;;  %v500_v19 = vld [vmem:[%s1413_s11 + $0x10] sm:$0xff] }
 0x489   :  { %v223_v22 = vpop.xlane.xlu1 %222 }
 0x48a   :  { %v224_v24 = vcvt.f32.s32 %v223_v22  ;;  %v354_v22 = vld [vmem:[%s1412_s9 + $0x40] sm:$0xff] }
 0x48b   :  { %427 = vmatpush.msra.mxu0 %v354_v22  ;;  %v518_v22 = vld [vmem:[%s1413_s11 + $0xa0] sm:$0xff] }
 0x48c   :  { %v227_v25 = vadd.s32 %v226_v23, %v224_v24  ;;  %v386_v23 = vld [vmem:[%s1412_s9 + $0x140] sm:$0xff]  ;;  %v355_v24 = vld [vmem:[%s1412_s9 + $0x48] sm:$0xff] }
 0x48d   :  { %447 = vmatpush.msrb.mxu1 %v386_v23  ;;  %467 = vmatpush.msrb.mxu2 %v355_v24  ;;  %v498_v23 = vld [vmem:[%s1413_s11] sm:$0xff]  ;;  %v517_v24 = vld [vmem:[%s1413_s11 + $0x98] sm:$0xff] }
 0x48e   :  { %vm228_vm15 = vcmp.eq.s32.totalorder %v1005_v39, %v227_v25  ;;  %v387_v25 = vld [vmem:[%s1412_s9 + $0x148] sm:$0xff] }
 0x48f   :  { %v1031_v26 = vsel %vm228_vm15, 1.0, %v852_v40  ;;  %448 = vmatpush.msrb.mxu1 %v384_v28  ;;  %v514_v28 = vld [vmem:[%s1413_s11 + $0x80] sm:$0xff] }
 0x490   :  { %811 = vmatmul.msk.f32.vlgmr.msra.gmra.mxu3 %vm231_vm14, %v1031_v26  ;;  %v257_v27 = vrot.slane %v1031_v26, 1 }
 0x491   :  { %336 = vmatpush.msra.mxu3 %v294_v29  ;;  %v353_v29 = vld [vmem:[%s1412_s9 + $0x38] sm:$0xff] }
 0x492   :  { %468 = vmatpush.msrb.mxu2 %v353_v29  ;;  %v410_v29 = vld [vmem:[%s1415_s10] sm:$0x3]  ;;  %s855_s10 = smov 104  }
 0x493   :  { %337 = vmatpush.msra.mxu3 %v292_v31 }
 0x494   :  { %469 = vmatpush.msrb.mxu2 %v351_v36 }
 0x495   :  { %338 = vmatpush.msra.mxu3 %v290_v33 }
 0x496   :  { %470 = vmatpush.msrb.mxu2 %v349_v42 }
 0x497   :  { %339 = vmatpush.msra.mxu3 %v288_v35  ;;  %v382_v35 = vld [vmem:[%s1412_s9 + $0x120] sm:$0xff] }
 0x498   :  { %813 = vmatmul.msk.f32.vlgmr.msrb.gmra.mxu3 %vm231_vm14, %v257_v27  ;;  %v352_v27 = vld [vmem:[%s1412_s9 + $0x30] sm:$0xff]  ;;  %449 = vmatpush.msrb.mxu1 %v382_v35  ;;  %v413_v35 = vperm.slane %v410_v29, 1 }
 0x499   :  { %476 = vmatpush.msrb.mxu3 %v409_v41  ;;  %428 = vmatpush.msra.mxu0 %v352_v27  ;;  %v380_v41 = vld [vmem:[%s1412_s9 + $0x110] sm:$0xff]  ;;  %v515_v27 = vld [vmem:[%s1413_s11 + $0x88] sm:$0xff] }
 0x49a   :  { %450 = vmatpush.msrb.mxu1 %v380_v41  ;;  %471 = vmatpush.msrb.mxu2 %v347_v46 }
 0x49b   :  { %477 = vmatpush.msrb.mxu3 %v407_v45  ;;  %429 = vmatpush.msra.mxu0 %v350_v34  ;;  %v378_v45 = vld [vmem:[%s1412_s9 + $0x100] sm:$0xff]  ;;  %s862_s9 = smov 38  }
 0x49c   :  { %451 = vmatpush.msrb.mxu1 %v378_v45 }
 0x49d   :  { %478 = vmatpush.msrb.mxu3 %v405_v49  ;;  %430 = vmatpush.msra.mxu0 %v348_v38  ;;  %v512_v49 = vld [vmem:[%s1413_s11 + $0x70] sm:$0xff] }
 0x49e   :  { %550 = vmatpush.msra.mxu1 %v529_v50 }
 0x49f   :  { %479 = vmatpush.msrb.mxu3 %v403_v53  ;;  %431 = vmatpush.msra.mxu0 %v346_v44  ;;  %v527_v53 = vld [vmem:[%s1413_s11 + $0xe8] sm:$0xff] }
 0x4a0   :  { %551 = vmatpush.msra.mxu1 %v528_v52 }
 0x4a1   :  { %480 = vmatpush.msrb.mxu3 %v401_v57  ;;  %530 = vmatpush.msrb.mxu0 %v513_v48  ;;  %v525_v57 = vld [vmem:[%s1413_s11 + $0xd8] sm:$0xff] }
 0x4a2   :  { %552 = vmatpush.msra.mxu1 %v527_v53 }
 0x4a3   :  { %481 = vmatpush.msrb.mxu3 %v399_v61  ;;  %531 = vmatpush.msrb.mxu0 %v512_v49  ;;  %v523_v61 = vld [vmem:[%s1413_s11 + $0xc8] sm:$0xff] }
 0x4a4   :  { %553 = vmatpush.msra.mxu1 %v526_v55 }
 0x4a5   :  { %482 = vmatpush.msrb.mxu3 %v397_v1  ;;  %532 = vmatpush.msrb.mxu0 %v511_v51  ;;  %v521_v1 = vld [vmem:[%s1413_s11 + $0xb8] sm:$0xff] }
 0x4a6   :  { %554 = vmatpush.msra.mxu1 %v525_v57 }
 0x4a7   :  { %483 = vmatpush.msrb.mxu3 %v395_v6  ;;  %533 = vmatpush.msrb.mxu0 %v510_v54  ;;  %v502_v6 = vld [vmem:[%s1413_s11 + $0x20] sm:$0xff] }
 0x4a8   :  { %555 = vmatpush.msra.mxu1 %v524_v59 }
 0x4a9   :  { %484 = vmatpush.msrb.mxu3 %v393_v12  ;;  %534 = vmatpush.msrb.mxu0 %v509_v56 }
 0x4aa   :  { %556 = vmatpush.msra.mxu1 %v523_v61 }
 0x4ab   :  { %485 = vmatpush.msrb.mxu3 %v391_v16  ;;  %535 = vmatpush.msrb.mxu0 %v508_v58 }
 0x4ac   :  { %557 = vmatpush.msra.mxu1 %v522_v63 }
 0x4ad   :  { %486 = vmatpush.msrb.mxu3 %v389_v20  ;;  %536 = vmatpush.msrb.mxu0 %v507_v60  ;;  %v519_v20 = vld [vmem:[%s1413_s11 + $0xa8] sm:$0xff] }
 0x4ae   :  { %558 = vmatpush.msra.mxu1 %v521_v1 }
 0x4af   :  { %487 = vmatpush.msrb.mxu3 %v387_v25  ;;  %537 = vmatpush.msrb.mxu0 %v506_v62  ;;  %v516_v25 = vld [vmem:[%s1413_s11 + $0x90] sm:$0xff] }
 0x4b0   :  { %559 = vmatpush.msra.mxu1 %v520_v18 }
 0x4b1   :  { %488 = vmatpush.msrb.mxu3 %v385_v30  ;;  %538 = vmatpush.msrb.mxu0 %v505_v0  ;;  %v412_v30 = vperm.slane %v410_v29, 0 }
 0x4b2   :  { %560 = vmatpush.msra.mxu1 %v519_v20 }
 0x4b3   :  { %489 = vmatpush.msrb.mxu3 %v383_v37  ;;  %539 = vmatpush.msrb.mxu0 %v504_v2 }
 0x4b4   :  { %561 = vmatpush.msra.mxu1 %v518_v22  ;;  %v666_v22 = vld [vmem:[%s1417_s12 + $0x10] sm:$0xff] }
 0x4b5   :  { %490 = vmatpush.msrb.mxu3 %v381_v43  ;;  %540 = vmatpush.msrb.mxu0 %v503_v3 }
 0x4b6   :  { %562 = vmatpush.msra.mxu1 %v517_v24 }
 0x4b7   :  { %491 = vmatpush.msrb.mxu3 %v379_v47  ;;  %541 = vmatpush.msrb.mxu0 %v502_v6 }
 0x4b8   :  { %563 = vmatpush.msra.mxu1 %v516_v25 }
 0x4b9   :  { %542 = vmatpush.msrb.mxu0 %v501_v17 }
 0x4ba   :  { %564 = vmatpush.msra.mxu1 %v515_v27 }
 0x4bb   :  { %543 = vmatpush.msrb.mxu0 %v500_v19 }
 0x4bc   :  { %565 = vmatpush.msra.mxu1 %v514_v28 }
 0x513   :  { %v254_v21 = vpop.f32.mrf.mxu3 }
 0x51b   :  { %v280_v31 = vpop.f32.mrf.mxu3 }
 0x51c   :  { %v284_v32 = vrot.slane %v280_v31, 7 }
 0x51e   :  { %v286_v33 = vsel %vm176_vm6, %v254_v21, %v284_v32  ;;  %v499_v21 = vld [vmem:[%s1413_s11 + $0x8] sm:$0xff]  ;;  %s854_s11 = smov 24  }
 0x51f   :  { %814 = vmatmul.msk.f32.vlgmr.msra.gmra.mxu2 %vm122_vm2, %v286_v33  ;;  %815 = vmatmul.msk.f32.vlgmr.msra.gmra.mxu3 %vm122_vm2, %v286_v33 }
 0x520   :  { %544 = vmatpush.msrb.mxu0 %v499_v21  ;;  %v667_v21 = vld [vmem:[%s1417_s12 + $0x18] sm:$0xff] }
 0x521   :  { %683 = vmatpush.msra.mxu3 %v667_v21 }
 0x522   :  { %545 = vmatpush.msrb.mxu0 %v498_v23  ;;  %v665_v23 = vld [vmem:[%s1417_s12 + $0x8] sm:$0xff] }
 0x523   :  { %684 = vmatpush.msra.mxu3 %v666_v22 }
 0x525   :  { %685 = vmatpush.msra.mxu3 %v665_v23 }
 0x5a2   :  { %v321_v11 = vpop.f32.mrf.mxu2  ;;  %v341_v12 = vpop.f32.mrf.mxu3 }
 0x5a3   :  { %v322_v13 = vadd.f32 %v321_v11, %v297_v7  ;;  %v342_v14 = vadd.f32 %v341_v12, %v298_v10 }
 0x5a5   :  { %v344_v15 = vmax.f32 %v322_v13, 0.0  ;;  %v345_v16 = vmax.f32 %v342_v14, 0.0 }
 0x5a7   :  { %432 = vmatmul.f32.vlgmr.msra.gmra.mxu0 %v344_v15  ;;  %452 = vmatmul.f32.vlgmr.msrb.gmra.mxu1 %v345_v16 }
 0x5a8   :  { %472 = vmatmul.f32.vlgmr.msrb.gmra.mxu2 %v344_v15  ;;  %492 = vmatmul.f32.vlgmr.msrb.gmra.mxu3 %v345_v16  ;;  %v639_v16 = vld [vmem:[%s1416_s4] sm:$0xff] }
 0x5a9   :  { %658 = vmatpush.msra.mxu2 %v639_v16 }
 0x624   :  { %v433_v31 = vpop.f32.mrf.mxu0  ;;  %v453_v33 = vpop.f32.mrf.mxu1 }
 0x625   :  { %v434_v32 = vadd.f32 %v433_v31, %v412_v30  ;;  %v664_v31 = vld [vmem:[%s1417_s12] sm:$0xff]  ;;  %s858_s12 = smov 112  }
 0x626   :  { %686 = vmatpush.msra.mxu3 %v664_v31 }
 0x627   :  { %v454_v34 = vadd.f32 %v453_v33, %v434_v32 }
 0x629   :  { %v496_v36 = vmax.f32 %v454_v34, 0.0 }
 0x62b   :  { %v473_v37 = vpop.f32.mrf.mxu2  ;;  %546 = vmatmul.f32.vlgmr.msrb.gmra.mxu0 %v496_v36  ;;  %v493_v41 = vpop.f32.mrf.mxu3 }
 0x62c   :  { %v474_v38 = vadd.f32 %v473_v37, %v413_v35 }
 0x62e   :  { %v494_v42 = vadd.f32 %v493_v41, %v474_v38 }
 0x630   :  { %v497_v43 = vmax.f32 %v494_v42, 0.0 }
 0x632   :  { %566 = vmatmul.f32.vlgmr.msra.gmra.mxu1 %v497_v43 }
 0x6a8   :  { %v547_v44 = vpop.f32.mrf.mxu0 }
 0x6af   :  { %v567_v45 = vpop.f32.mrf.mxu1 }
 0x6b0   :  { %v568_v46 = vadd.f32 %v567_v45, %v547_v44 }
 0x6b2   :  { %572 = vrot.lane.b32.xlu2 %v568_v46, %s854_s11 }
 0x6ba   :  { %618 = vrot.lane.b32.xlu2 %v1005_v39, %s854_s11 }
 0x70c   :  { %v573_v47 = vpop.permute.xlu2 %572 }
 0x70d   :  { %v575_v48 = vsel %vm570_vm0, %v573_v47, -1e+08 }
 0x70e   :  { %v577_v49 = vsel %vm576_vm1, %v575_v48, -inf }
 0x70f   :  { %578 = vmax.xlane.f32.xlu1 %v577_v49 }
 0x714   :  { %v619_v10 = vpop.permute.xlu2 %618 }
 0x782   :  { %v579_v50 = vpop.xlane.xlu1 %578 }
 0x783   :  { %v580_v51 = vsub.f32 %v575_v48, %v579_v50 }
 0x785   :  { %v581_v52 = vmul.f32 1.442695, %v580_v51 }
 0x787   :  { %838 = vpow2.f32 %v581_v52 }
 0x78d   :  { %v839_v53 = vpop.eup %838 }
 0x78e   :  { %584 = vrot.lane.b32.xlu0 %v839_v53, %s855_s10 }
 0x796   :  { %610 = vrot.lane.b32.xlu0 %v1020_v8, %s856_s7 }
 0x800   :  { %v585_v54 = vpop.permute.xlu0 %584 }
 0x801   :  { %v588_v55 = vsel %vm587_vm3, %v585_v54, 0.0 }
 0x802   :  { %589 = vadd.xlane.f32.xlu1 %v588_v55 }
 0x808   :  { %v611_v3 = vpop.permute.xlu0 %610 }
 0x875   :  { %v590_v4 = vpop.xlane.xlu1 %589 }
 0x876   :  { %840 = vrcp.f32 %v590_v4  ;;  %v602_v59 = vand.u32 2147483648, %v590_v4  ;;  %v600_v61 = vand.u32 2147483647, %v590_v4  ;;  %vm596_vm6 = vweird.f32 %v590_v4 }
 0x878   :  { %v603_v63 = vor.u32 1.1754944e-38, %v602_v59  ;;  %vm601_vm8 = vcmp.eq.f32.partialorder %v600_v61, 8.507059e+37 }
 0x87c   :  { %v841_v56 = vpop.eup %840 }
 0x87d   :  { %v592_v57 = vmul.f32 %v841_v56, %v590_v4  ;;  %vm597_vm4 = vweird.f32 %v841_v56 }
 0x87e   :  { %vm598_vm7 = vmor %vm596_vm6, %vm597_vm4  ;;  %vm778_vm6 = vcmask 97280  }
 0x87f   :  { %v593_v58 = vsub.f32 1.0, %v592_v57 }
 0x881   :  { %v594_v60 = vmul.f32 %v841_v56, %v593_v58 }
 0x883   :  { %v595_v62 = vadd.f32 %v841_v56, %v594_v60 }
 0x885   :  { %v599_v0 = vsel %vm598_vm7, %v841_v56, %v595_v62  ;;  %vm780_vm7 = vcmask 162816  }
 0x886   :  { %v604_v1 = vsel %vm601_vm8, %v603_v63, %v599_v0  ;;  %vm782_vm8 = vcmask 228352  }
 0x887   :  { %v605_v2 = vmul.f32 %v839_v53, %v604_v1 }
 0x889   :  { %v1362_v5 = vadd.f32 1e-08, %v605_v2 }
 0x88b   :  { %v613_v6 = vadd.f32 %v611_v3, %v1362_v5 }
 0x88d   :  { %v614_v7 = vsel %vm576_vm1, %v613_v6, -inf }
 0x88e   :  { %615 = vmax.xlane.f32.xlu1 %v614_v7 }
 0x901   :  { %v616_v11 = vpop.xlane.xlu1 %615 }
 0x902   :  { %vm617_vm9 = vcmp.ge.f32.partialorder %v613_v6, %v616_v11 }
 0x903   :  { %v620_v12 = vsel %vm617_vm9, %v619_v10, 1073741824  ;;  %vm784_vm9 = vcmask 293888  }
 0x904   :  { %v621_v13 = vsel %vm576_vm1, %v620_v12, 2147483647 }
 0x905   :  { %v623_v14 = vshra.s32 %v621_v13, 16  ;;  %v622_v17 = vand.u32 65535, %v621_v13 }
 0x907   :  { %v625_v15 = vcvt.s32.f32 %v623_v14  ;;  %v624_v19 = vcvt.s32.f32 %v622_v17 }
 0x909   :  { %626 = vmin.xlane.f32.xlu0 %v625_v15 }
 0x97c   :  { %v627_v18 = vpop.xlane.xlu0 %626 }
 0x97d   :  { %vm628_vm10 = vcmp.eq.f32.partialorder %v625_v15, %v627_v18  ;;  %v633_v24 = vcvt.f32.s32 %v627_v18 }
 0x97e   :  { %v629_v20 = vsel %vm628_vm10, %v624_v19, inf  ;;  %vm786_vm10 = vcmask 310272  }
 0x97f   :  { %630 = vmin.xlane.f32.xlu1 %v629_v20  ;;  %v634_v27 = vshll.u32 %v633_v24, 16 }
 0x9f2   :  { %v631_v25 = vpop.xlane.xlu1 %630 }
 0x9f3   :  { %v632_v28 = vcvt.f32.s32 %v631_v25 }
 0x9f5   :  { %v635_v29 = vadd.s32 %v634_v27, %v632_v28 }
 0x9f7   :  { %vm636_vm11 = vcmp.eq.s32.totalorder %v1005_v39, %v635_v29 }
 0x9f8   :  { %v816_v30 = vsel %vm636_vm11, 1.0, %v852_v40  ;;  %vm788_vm11 = vcmask 326656  }
 0x9f9   :  { %817 = vmatmul.msk.f32.vlgmr.msra.gmra.mxu2 %vm164_vm5, %v816_v30 }
 0xa7c   :  { %v660_v32 = vpop.f32.mrf.mxu2 }
 0xa7d   :  { %v663_v33 = vmax.f32 %v660_v32, 0.0 }
 0xa7f   :  { %818 = vmatmul.msk.f32.vlgmr.msra.gmra.mxu3 %vm122_vm2, %v663_v33 }
 0xb02   :  { %v688_v34 = vpop.f32.mrf.mxu3 }
 0xb03   :  { %v692_v35 = vsel %vm691_vm12, %v688_v34, -inf }
 0xb04   :  { %693 = vmax.xlane.f32.xlu2 %v692_v35 }
 0xb1c   :  { %750 = vrot.lane.b32.xlu2 %v1031_v26, %s857_s27 }
 0xb77   :  { %v694_v36 = vpop.xlane.xlu2 %693 }
 0xb78   :  { %v695_v37 = vsub.f32 %v688_v34, %v694_v36 }
 0xb7a   :  { %v696_v38 = vmul.f32 1.442695, %v695_v37 }
 0xb7c   :  { %842 = vpow2.f32 %v696_v38 }
 0xb7f   :  { %v751_v11 = vpop.permute.xlu2 %750 }
 0xb82   :  { %v843_v41 = vpop.eup %842 }
 0xb83   :  { %v698_v42 = vsel %vm691_vm12, %v843_v41, 0.0 }
 0xb84   :  { %699 = vadd.xlane.f32.xlu1 %v698_v42 }
 0xb9d   :  { %719 = vrot.lane.b32.xlu1 %v1020_v8, %s858_s12 }
 0xbf7   :  { %v700_v43 = vpop.xlane.xlu1 %699 }
 0xbf8   :  { %844 = vrcp.f32 %v700_v43  ;;  %v712_v47 = vand.u32 2147483648, %v700_v43  ;;  %v710_v26 = vand.u32 2147483647, %v700_v43  ;;  %vm706_vm13 = vweird.f32 %v700_v43 }
 0xbf9   :  { %846 = vlog2.f32 %v1022_v9 }
 0xbfa   :  { %v713_v50 = vor.u32 1.1754944e-38, %v712_v47  ;;  %vm711_vm0 = vcmp.eq.f32.partialorder %v710_v26, 8.507059e+37 }
 0xbfe   :  { %v845_v44 = vpop.eup %844 }
 0xbff   :  { %v702_v45 = vmul.f32 %v845_v44, %v700_v43  ;;  %vm707_vm2 = vweird.f32 %v845_v44  ;;  %v847_v56 = vpop.eup %846 }
 0xc00   :  { %vm708_vm15 = vmor %vm706_vm13, %vm707_vm2  ;;  %v205_v57 = vmul.f32 0.6931472, %v847_v56 }
 0xc01   :  { %v703_v46 = vsub.f32 1.0, %v702_v45 }
 0xc03   :  { %v704_v48 = vmul.f32 %v845_v44, %v703_v46 }
 0xc05   :  { %v705_v49 = vadd.f32 %v845_v44, %v704_v48 }
 0xc07   :  { %v709_v51 = vsel %vm708_vm15, %v845_v44, %v705_v49 }
 0xc08   :  { %v714_v52 = vsel %vm711_vm0, %v713_v50, %v709_v51 }
 0xc09   :  { %v715_v53 = vmul.f32 %v843_v41, %v714_v52 }
 0xc0b   :  { %v716_v54 = vadd.f32 1e-08, %v715_v53 }
 0xc0d   :  { %848 = vlog2.f32 %v716_v54 }
 0xc0e   :  { %850 = vlog2.f32 %v1362_v5 }
 0xc0f   :  { %v720_v55 = vpop.permute.xlu1 %719 }
 0xc10   :  { %v722_v8 = vadd.f32 %v720_v55, %v716_v54 }
 0xc12   :  { %v723_v4 = vsel %vm691_vm12, %v722_v8, -inf }
 0xc13   :  { %724 = vmax.xlane.f32.xlu0 %v723_v4  ;;  %v849_v58 = vpop.eup %848 }
 0xc14   :  { %v718_v59 = vmul.f32 0.6931472, %v849_v58  ;;  %v851_v7 = vpop.eup %850 }
 0xc15   :  { %v608_v10 = vmul.f32 0.6931472, %v851_v7 }
 0xc27   :  { %747 = vrot.lane.b32.xlu0 %v205_v57, %s859_s28 }
 0xc2f   :  { %754 = vrot.lane.b32.xlu0 %v1362_v5, %s860_s0 }
 0xc37   :  { %761 = vrot.lane.b32.xlu0 %v816_v30, %s861_s29 }
 0xc3f   :  { %769 = vrot.lane.b32.xlu0 %v718_v59, %s862_s9 }
 0xc86   :  { %v725_v60 = vpop.xlane.xlu0 %724 }
 0xc87   :  { %vm726_vm1 = vcmp.ge.f32.partialorder %v722_v8, %v725_v60 }
 0xc88   :  { %v727_v61 = vsel %vm726_vm1, %v1005_v39, 1073741824 }
 0xc89   :  { %v728_v62 = vsel %vm691_vm12, %v727_v61, 2147483647  ;;  %vm790_vm12 = vcmask 343040  }
 0xc8a   :  { %v730_v63 = vshra.s32 %v728_v62, 16  ;;  %v729_v1 = vand.u32 65535, %v728_v62 }
 0xc8c   :  { %v732_v0 = vcvt.s32.f32 %v730_v63  ;;  %v731_v3 = vcvt.s32.f32 %v729_v1 }
 0xc8e   :  { %733 = vmin.xlane.f32.xlu1 %v732_v0 }
 0xc99   :  { %v748_v18 = vpop.permute.xlu0 %747 }
 0xc9a   :  { %v776_v20 = vsel %vm231_vm14, %v1022_v9, %v748_v18 }
 0xc9b   :  { %v777_v22 = vsel %vm164_vm5, %v776_v20, %v751_v11 }
 0xca1   :  { %v755_v5 = vpop.permute.xlu0 %754 }
 0xca2   :  { %v779_v23 = vsel %vm778_vm6, %v777_v22, %v755_v5 }
 0xca9   :  { %v762_v21 = vpop.permute.xlu0 %761 }
 0xcb1   :  { %v770_v27 = vpop.permute.xlu0 %769 }
 0xd01   :  { %v734_v2 = vpop.xlane.xlu1 %733 }
 0xd02   :  { %vm735_vm3 = vcmp.eq.f32.partialorder %v732_v0, %v734_v2  ;;  %v740_v12 = vcvt.f32.s32 %v734_v2 }
 0xd03   :  { %v736_v6 = vsel %vm735_vm3, %v731_v3, inf }
 0xd04   :  { %737 = vmin.xlane.f32.xlu2 %v736_v6  ;;  %v741_v14 = vshll.u32 %v740_v12, 16 }
 0xd1c   :  { %758 = vrot.lane.b32.xlu2 %v608_v10, %s853_s2 }
 0xd24   :  { %765 = vrot.lane.b32.xlu2 %v716_v54, %s863_s1 }
 0xd77   :  { %v738_v13 = vpop.xlane.xlu2 %737 }
 0xd78   :  { %v739_v15 = vcvt.f32.s32 %v738_v13 }
 0xd7a   :  { %v742_v16 = vadd.s32 %v741_v14, %v739_v15 }
 0xd7c   :  { %vm743_vm4 = vcmp.eq.s32.totalorder %v1005_v39, %v742_v16 }
 0xd7d   :  { %v819_v17 = vsel %vm743_vm4, 1.0, %v852_v40 }
 0xd7e   :  { %773 = vrot.lane.b32.xlu1 %v819_v17, %s864_s30 }
 0xd7f   :  { %v759_v19 = vpop.permute.xlu2 %758 }
 0xd80   :  { %v781_v24 = vsel %vm780_vm7, %v779_v23, %v759_v19 }
 0xd81   :  { %v783_v25 = vsel %vm782_vm8, %v781_v24, %v762_v21 }
 0xd87   :  { %v766_v39 = vpop.permute.xlu2 %765 }
 0xd88   :  { %v785_v40 = vsel %vm784_vm9, %v783_v25, %v766_v39 }
 0xd89   :  { %v787_v29 = vsel %vm786_vm10, %v785_v40, %v770_v27 }
 0xdf0   :  { %v774_v28 = vpop.permute.xlu1 %773 }
 0xdf1   :  { %v789_v30 = vsel %vm788_vm11, %v787_v29, %v774_v28 }
 0xdf2   :  { %v791_v9 = vsel %vm790_vm12, %v789_v30, 0.0 }
 0xdf3   :  { %792 = vst [vmem:[%s1418_s13] sm:$0x3] %v791_v9 }

</bundles_post_ra>
